<compile_context>
chip_gen: v5e
topology: v5e:2x2
jax: 0.10.0
libtpu: 0.0.40
codegen_flags: <defaults>
</compile_context>

<pallas_src>
import functools

import jax
import jax.numpy as jnp
from jax.experimental import pallas as pl
from jax.experimental.pallas import tpu as pltpu


def _round_up(x, m):
    return (x + m - 1) // m * m


def _cdiv(a, b):
    return (a + b - 1) // b


def _lstm_kernel(num_layers, seq_len, need_mask, *refs):
    """refs = [x, (w_ih, w_hh, b) * L, out, h_sc, c_sc, seq_sc, gx_sc]."""
    L = num_layers
    x_ref = refs[0]
    layer_refs = refs[1:1 + 3 * L]
    out_ref = refs[1 + 3 * L]
    h_sc, c_sc, seq_sc, gx_sc = refs[2 + 3 * L:2 + 3 * L + 4]

    Tc, B_blk, _ = x_ref.shape        # time-chunk length, batch block
    G = out_ref.shape[-1]             # per-gate (and hidden) lane width
    G4 = 4 * G

    t_idx = pl.program_id(1)          # time-chunk index ("arbitrary" axis)

    # Reset the carried per-layer (h, c) state at the first chunk of each batch block.
    @pl.when(t_idx == 0)
    def _():
        h_sc[...] = jnp.zeros_like(h_sc)
        c_sc[...] = jnp.zeros_like(c_sc)

    base_t = t_idx * Tc               # global timestep offset of this chunk

    for l in range(L):
        w_ih = layer_refs[3 * l][...]        # (d_in, 4G), pre-transposed on host
        w_hh = layer_refs[3 * l + 1][...]    # (G,    4G)
        b = layer_refs[3 * l + 2][...]       # (1,    4G), f32
        last_layer = (l == L - 1)

        # ---- batched input projection over the whole chunk: one MXU matmul.
        xin = x_ref[...] if l == 0 else seq_sc[...]
        d_in = xin.shape[-1]
        gx = jnp.dot(xin.reshape(Tc * B_blk, d_in).astype(w_ih.dtype), w_ih,
                     preferred_element_type=jnp.float32) + b
        gx_sc[...] = gx.reshape(Tc, B_blk, G4).astype(gx_sc.dtype)

        # ---- sequential recurrence: only h @ W_hh per step.
        def step(t, carry):
            h, c = carry
            gates = gx_sc[t].astype(jnp.float32) + jnp.dot(
                h.astype(w_hh.dtype), w_hh, preferred_element_type=jnp.float32)
            # PyTorch gate order i, f, g, o; i/f sigmoids fused over one lane range.
            if_g = jax.nn.sigmoid(gates[:, :2 * G])
            g_g = jnp.tanh(gates[:, 2 * G:3 * G])
            o_g = jax.nn.sigmoid(gates[:, 3 * G:])
            i_g, f_g = if_g[:, :G], if_g[:, G:]
            c_new = f_g * c + i_g * g_g
            h_new = o_g * jnp.tanh(c_new)
            if need_mask:
                # T was padded up to a multiple of the chunk: hold state on pad steps.
                valid = (base_t + t) < seq_len
                c_new = jnp.where(valid, c_new, c)
                h_new = jnp.where(valid, h_new, h)
            if not last_layer:
                seq_sc[t] = h_new.astype(seq_sc.dtype)   # next layer's input
            return h_new, c_new

        h_last, c_last = jax.lax.fori_loop(
            0, Tc, step, (h_sc[l], c_sc[l]), unroll=min(Tc, 8))
        h_sc[l] = h_last
        c_sc[l] = c_last

    # Lane-dense final hidden state of the top layer (tiny; written every chunk).
    out_ref[...] = h_sc[L - 1]


def _pad_gate_cols(a, H, G):
    """(..., 4H) -> (..., 4G): zero-pad each of the 4 gate blocks to width G."""
    if G == H:
        return a
    pad = [(0, 0)] * (a.ndim - 1) + [(0, G - H)]
    return jnp.concatenate(
        [jnp.pad(a[..., g * H:(g + 1) * H], pad) for g in range(4)], axis=-1)


def _vmem_bytes(shape, dtype):
    """Lane/sublane-padded VMEM footprint estimate for one buffer."""
    itemsize = jnp.dtype(dtype).itemsize
    s = list(shape)
    s[-1] = _round_up(s[-1], 128)
    if len(s) >= 2:
        s[-2] = _round_up(s[-2], 32 // itemsize)
    n = 1
    for d in s:
        n *= d
    return n * itemsize


def lstm_pallas(x, params, num_layers, hidden_size, *,
                matmul_dtype=jnp.float32, t_chunk=64, num_batch_blocks=None):
    """x: (B, T, D) float32 -> (B, 1) float32."""
    B, T, D = x.shape
    H, L = hidden_size, num_layers

    # Per-gate lane width: smallest multiple of 32 >= H, so 4*G is a multiple of 128
    # (lane-dense gate matmul output) without per-gate padding to 128.
    G = _round_up(H, 32)

    # Batch blocking: split across >=2 blocks when big enough (v7x megacore).
    B8 = _round_up(B, 8)
    if num_batch_blocks is None:
        num_batch_blocks = 2 if B8 >= 16 else 1
    B_blk = _round_up(_cdiv(B8, num_batch_blocks), 8)
    B_pad = B_blk * num_batch_blocks

    # Time chunking.
    Tc = max(1, min(T, t_chunk))
    num_chunks = _cdiv(T, Tc)
    T_pad = Tc * num_chunks
    need_mask = (T_pad != T)

    # (B, T, D) -> time-major (T_pad, B_pad, D); D is NOT lane-padded (full-dim block).
    xt = jnp.transpose(x, (1, 0, 2))
    xt = jnp.pad(xt, ((0, T_pad - T), (0, B_pad - B), (0, 0))).astype(matmul_dtype)

    inputs = [xt]
    in_specs = [pl.BlockSpec((Tc, B_blk, D), lambda bb, tt: (tt, bb, 0))]
    for l in range(L):
        d_in = D if l == 0 else H
        d_in_pad = D if l == 0 else G
        # Pre-transpose once on the host; zero-pad gate columns to G and the
        # contraction dim to d_in_pad (zero pads keep the math exact).
        w_ih = _pad_gate_cols(params[f'w_ih_{l}'].T, H, G)
        w_ih = jnp.pad(w_ih, ((0, d_in_pad - d_in), (0, 0))).astype(matmul_dtype)
        w_hh = _pad_gate_cols(params[f'w_hh_{l}'].T, H, G)
        w_hh = jnp.pad(w_hh, ((0, G - H), (0, 0))).astype(matmul_dtype)
        b = _pad_gate_cols(params[f'b_{l}'], H, G).astype(jnp.float32)
        inputs += [w_ih, w_hh, b]
        in_specs += [
            pl.BlockSpec((d_in_pad, 4 * G), lambda bb, tt: (0, 0)),
            pl.BlockSpec((G, 4 * G), lambda bb, tt: (0, 0)),
            pl.BlockSpec((1, 4 * G), lambda bb, tt: (0, 0)),
        ]

    store_dtype = matmul_dtype   # gx/seq scratch follow the matmul precision mode
    seq_len = Tc if L > 1 else 1
    scratch_shapes = [
        pltpu.VMEM((L, B_blk, G), jnp.float32),         # h state per layer
        pltpu.VMEM((L, B_blk, G), jnp.float32),         # c state per layer
        pltpu.VMEM((seq_len, B_blk, G), store_dtype),   # layer-output sequence (chunk)
        pltpu.VMEM((Tc, B_blk, 4 * G), store_dtype),    # x @ W_ih + b (chunk)
    ]

    # Explicit VMEM budget: double-buffered streamed/weight blocks + scratch + temps.
    vmem = 2 * _vmem_bytes((Tc, B_blk, D), matmul_dtype)
    for l in range(L):
        d_in_pad = D if l == 0 else G
        vmem += 2 * _vmem_bytes((d_in_pad, 4 * G), matmul_dtype)
        vmem += 2 * _vmem_bytes((G, 4 * G), matmul_dtype)
        vmem += 2 * _vmem_bytes((1, 4 * G), jnp.float32)
    vmem += 2 * _vmem_bytes((B_blk, G), jnp.float32)            # output block
    vmem += 2 * _vmem_bytes((L, B_blk, G), jnp.float32)         # h + c scratch
    vmem += _vmem_bytes((seq_len, B_blk, G), store_dtype)
    vmem += _vmem_bytes((Tc, B_blk, 4 * G), store_dtype)
    vmem += _vmem_bytes((Tc * B_blk, 4 * G), jnp.float32)       # gx f32 temporary
    vmem_limit = int(min(128 << 20, max(32 << 20, int(vmem * 1.5) + (2 << 20))))

    kernel = functools.partial(_lstm_kernel, L, T, need_mask)

    h_final = pl.pallas_call(
        kernel,
        out_shape=jax.ShapeDtypeStruct((B_pad, G), jnp.float32),
        grid_spec=pltpu.PrefetchScalarGridSpec(
            num_scalar_prefetch=0,
            grid=(num_batch_blocks, num_chunks),
            in_specs=in_specs,
            out_specs=pl.BlockSpec((B_blk, G), lambda bb, tt: (bb, 0)),
            scratch_shapes=scratch_shapes,
        ),
        compiler_params=pltpu.CompilerParams(
            dimension_semantics=("parallel", "arbitrary"),
            vmem_limit_bytes=vmem_limit),
    )(*inputs)

    # Trivial hidden->1 FC outside the kernel (keeps kernel output lane-dense).
    h_final = h_final[:B, :H]
    return h_final @ params['w_fc'].T + params['b_fc']


def lstm_ref(x, params, num_layers, hidden_size):
    """Pure-JAX reference matching torch.nn.LSTM(batch_first=True) + Linear."""
    B, T, D = x.shape
    H, L = hidden_size, num_layers
    inp = x
    for l in range(L):
        w_ih = params[f'w_ih_{l}']
        w_hh = params[f'w_hh_{l}']
        b = params[f'b_{l}'][0]
        h = jnp.zeros((B, H), jnp.float32)
        c = jnp.zeros((B, H), jnp.float32)
        outs = []
        for t in range(T):
            gates = inp[:, t] @ w_ih.T + h @ w_hh.T + b
            i_g = jax.nn.sigmoid(gates[:, 0 * H:1 * H])
            f_g = jax.nn.sigmoid(gates[:, 1 * H:2 * H])
            g_g = jnp.tanh(gates[:, 2 * H:3 * H])
            o_g = jax.nn.sigmoid(gates[:, 3 * H:4 * H])
            c = f_g * c + i_g * g_g
            h = o_g * jnp.tanh(c)
            outs.append(h)
        inp = jnp.stack(outs, axis=1)
    return inp[:, -1] @ params['w_fc'].T + params['b_fc'][0]


def init_params(key, input_size, hidden_size, num_layers):
    """Deterministic init mirroring nn.LSTM / nn.Linear parameter shapes."""
    H = hidden_size
    params = {}
    k = 1.0 / jnp.sqrt(H)
    keys = jax.random.split(key, 4 * num_layers + 2)
    ki = 0
    for l in range(num_layers):
        d_in = input_size if l == 0 else H
        params[f'w_ih_{l}'] = jax.random.uniform(
            keys[ki], (4 * H, d_in), jnp.float32, -k, k); ki += 1
        params[f'w_hh_{l}'] = jax.random.uniform(
            keys[ki], (4 * H, H), jnp.float32, -k, k); ki += 1
        b_ih = jax.random.uniform(keys[ki], (4 * H,), jnp.float32, -k, k); ki += 1
        b_hh = jax.random.uniform(keys[ki], (4 * H,), jnp.float32, -k, k); ki += 1
        params[f'b_{l}'] = (b_ih + b_hh).reshape(1, 4 * H)
    kf = 1.0 / jnp.sqrt(H)
    params['w_fc'] = jax.random.uniform(keys[ki], (1, H), jnp.float32, -kf, kf); ki += 1
    params['b_fc'] = jax.random.uniform(keys[ki], (1, 1), jnp.float32, -kf, kf)
    return params


if __name__ == "__main__":
    B, T, D, H, L = 2, 8, 16, 32, 2

    key = jax.random.PRNGKey(0)
    k_x, k_p = jax.random.split(key)
    x = jax.random.normal(k_x, (B, T, D), jnp.float32)
    params = init_params(k_p, D, H, L)

    out = lstm_pallas(x, params, num_layers=L, hidden_size=H)
    out = jax.block_until_ready(out)

    ref = lstm_ref(x, params, num_layers=L, hidden_size=H)
    assert out.shape == (B, 1)
    assert jnp.allclose(out, ref, atol=1e-4, rtol=1e-4), (out, ref)

    print("KERNEL_OK")
</pallas_src>

<mosaic_0001>
module attributes {stable_mosaic.version = 11 : i64} {
  func.func @_lstm_kernel(%arg0: i32, %arg1: i32, %arg2: memref<8x8x16xf32, #tpu.memory_space<vmem>>, %arg3: memref<16x128xf32, #tpu.memory_space<vmem>>, %arg4: memref<32x128xf32, #tpu.memory_space<vmem>>, %arg5: memref<1x128xf32, #tpu.memory_space<vmem>>, %arg6: memref<32x128xf32, #tpu.memory_space<vmem>>, %arg7: memref<32x128xf32, #tpu.memory_space<vmem>>, %arg8: memref<1x128xf32, #tpu.memory_space<vmem>>, %arg9: memref<8x32xf32, #tpu.memory_space<vmem>>, %arg10: memref<2x8x32xf32, #tpu.memory_space<vmem>>, %arg11: memref<2x8x32xf32, #tpu.memory_space<vmem>>, %arg12: memref<8x8x32xf32, #tpu.memory_space<vmem>>, %arg13: memref<8x8x128xf32, #tpu.memory_space<vmem>>) attributes {dimension_semantics = [#tpu.dimension_semantics<parallel>, #tpu.dimension_semantics<arbitrary>], iteration_bounds = array<i64: 1, 1>, scalar_prefetch = 0 : i64, scratch_operands = 4 : i64, tpu.core_type = #tpu.core_type<tc>, window_params = [{transform_indices = @transform_0, window_bounds = array<i64: 8, 8, 16>}, {pipeline_mode = #tpu.pipeline_mode<synchronous>, transform_indices = @transform_1, window_bounds = array<i64: 16, 128>}, {pipeline_mode = #tpu.pipeline_mode<synchronous>, transform_indices = @transform_2, window_bounds = array<i64: 32, 128>}, {pipeline_mode = #tpu.pipeline_mode<synchronous>, transform_indices = @transform_3, window_bounds = array<i64: 1, 128>}, {pipeline_mode = #tpu.pipeline_mode<synchronous>, transform_indices = @transform_4, window_bounds = array<i64: 32, 128>}, {pipeline_mode = #tpu.pipeline_mode<synchronous>, transform_indices = @transform_5, window_bounds = array<i64: 32, 128>}, {pipeline_mode = #tpu.pipeline_mode<synchronous>, transform_indices = @transform_6, window_bounds = array<i64: 1, 128>}, {transform_indices = @transform_7, window_bounds = array<i64: 8, 32>}]} {
    %c0_i32 = arith.constant 0 : i32
    %0 = arith.cmpi eq, %arg1, %c0_i32 : i32
    %1 = arith.extui %0 : i1 to i32
    %c0_i32_0 = arith.constant 0 : i32
    %2 = arith.cmpi ne, %1, %c0_i32_0 : i32
    scf.if %2 {
      %cst_159 = arith.constant 0.000000e+00 : f32
      %494 = vector.broadcast %cst_159 : f32 to vector<2x8x32xf32>
      %c0_160 = arith.constant 0 : index
      %c0_161 = arith.constant 0 : index
      %c0_162 = arith.constant 0 : index
      %495 = vector.load %arg10[%c0_160, %c0_161, %c0_162] : memref<2x8x32xf32, #tpu.memory_space<vmem>>, vector<2x8x32xf32>
      tpu.vector_store %arg10[%c0_160, %c0_161, %c0_162], %494 {strides = array<i32>} : memref<2x8x32xf32, #tpu.memory_space<vmem>>, vector<2x8x32xf32>,
      %cst_163 = arith.constant 0.000000e+00 : f32
      %496 = vector.broadcast %cst_163 : f32 to vector<2x8x32xf32>
      %c0_164 = arith.constant 0 : index
      %c0_165 = arith.constant 0 : index
      %c0_166 = arith.constant 0 : index
      %497 = vector.load %arg11[%c0_164, %c0_165, %c0_166] : memref<2x8x32xf32, #tpu.memory_space<vmem>>, vector<2x8x32xf32>
      tpu.vector_store %arg11[%c0_164, %c0_165, %c0_166], %496 {strides = array<i32>} : memref<2x8x32xf32, #tpu.memory_space<vmem>>, vector<2x8x32xf32>,
    } else {
    }
    %c0 = arith.constant 0 : index
    %c0_1 = arith.constant 0 : index
    %3 = vector.load %arg3[%c0, %c0_1] : memref<16x128xf32, #tpu.memory_space<vmem>>, vector<16x128xf32>
    %c0_2 = arith.constant 0 : index
    %c0_3 = arith.constant 0 : index
    %4 = vector.load %arg4[%c0_2, %c0_3] : memref<32x128xf32, #tpu.memory_space<vmem>>, vector<32x128xf32>
    %c0_4 = arith.constant 0 : index
    %c0_5 = arith.constant 0 : index
    %5 = vector.load %arg5[%c0_4, %c0_5] : memref<1x128xf32, #tpu.memory_space<vmem>>, vector<1x128xf32>
    %c0_6 = arith.constant 0 : index
    %c0_7 = arith.constant 0 : index
    %c0_8 = arith.constant 0 : index
    %6 = vector.load %arg2[%c0_6, %c0_7, %c0_8] : memref<8x8x16xf32, #tpu.memory_space<vmem>>, vector<8x8x16xf32>
    %7 = vector.shape_cast %6 : vector<8x8x16xf32> to vector<64x16xf32>
    %cst = arith.constant dense<0.000000e+00> : vector<64x128xf32>
    %8 = tpu.matmul %7, %3, %cst {dimension_numbers = #tpu.dot_dimension_numbers<[1], [0], [0], [1], [0, 0, 1, 1], [], []>} : vector<64x16xf32>, vector<16x128xf32>, vector<64x128xf32> -> vector<64x128xf32>
    %9 = vector.broadcast %5 : vector<1x128xf32> to vector<64x128xf32>
    %10 = arith.addf %8, %9 : vector<64x128xf32>
    %11 = vector.shape_cast %10 : vector<64x128xf32> to vector<8x8x128xf32>
    %c0_9 = arith.constant 0 : index
    %c0_10 = arith.constant 0 : index
    %c0_11 = arith.constant 0 : index
    %12 = vector.load %arg13[%c0_9, %c0_10, %c0_11] : memref<8x8x128xf32, #tpu.memory_space<vmem>>, vector<8x8x128xf32>
    tpu.vector_store %arg13[%c0_9, %c0_10, %c0_11], %11 {strides = array<i32>} : memref<8x8x128xf32, #tpu.memory_space<vmem>>, vector<8x8x128xf32>,
    %c0_12 = arith.constant 0 : index
    %c0_13 = arith.constant 0 : index
    %c0_14 = arith.constant 0 : index
    %13 = vector.load %arg10[%c0_12, %c0_13, %c0_14] : memref<2x8x32xf32, #tpu.memory_space<vmem>>, vector<1x8x32xf32>
    %14 = vector.shape_cast %13 : vector<1x8x32xf32> to vector<8x32xf32>
    %c0_15 = arith.constant 0 : index
    %c0_16 = arith.constant 0 : index
    %c0_17 = arith.constant 0 : index
    %15 = vector.load %arg11[%c0_15, %c0_16, %c0_17] : memref<2x8x32xf32, #tpu.memory_space<vmem>>, vector<1x8x32xf32>
    %16 = vector.shape_cast %15 : vector<1x8x32xf32> to vector<8x32xf32>
    %c0_i32_18 = arith.constant 0 : i32
    %17 = arith.index_cast %c0_i32_18 : i32 to index
    %c0_19 = arith.constant 0 : index
    %c0_20 = arith.constant 0 : index
    %18 = vector.load %arg13[%17, %c0_19, %c0_20] : memref<8x8x128xf32, #tpu.memory_space<vmem>>, vector<1x8x128xf32>
    %19 = vector.shape_cast %18 : vector<1x8x128xf32> to vector<8x128xf32>
    %cst_21 = arith.constant dense<0.000000e+00> : vector<8x128xf32>
    %20 = tpu.matmul %14, %4, %cst_21 {dimension_numbers = #tpu.dot_dimension_numbers<[1], [0], [0], [1], [0, 0, 1, 1], [], []>} : vector<8x32xf32>, vector<32x128xf32>, vector<8x128xf32> -> vector<8x128xf32>
    %21 = arith.addf %19, %20 : vector<8x128xf32>
    %22 = vector.extract_strided_slice %21 {offsets = [0, 0], sizes = [8, 64], strides = [1, 1]} : vector<8x128xf32> to vector<8x64xf32>
    %23 = arith.negf %22 : vector<8x64xf32>
    %24 = math.exp %23 : vector<8x64xf32>
    %cst_22 = arith.constant 1.000000e+00 : f32
    %25 = vector.broadcast %cst_22 : f32 to vector<8x64xf32>
    %26 = arith.addf %25, %24 : vector<8x64xf32>
    %27 = arith.divf %25, %26 : vector<8x64xf32>
    %28 = vector.extract_strided_slice %21 {offsets = [0, 64], sizes = [8, 32], strides = [1, 1]} : vector<8x128xf32> to vector<8x32xf32>
    %29 = math.tanh %28 : vector<8x32xf32>
    %30 = vector.extract_strided_slice %21 {offsets = [0, 96], sizes = [8, 32], strides = [1, 1]} : vector<8x128xf32> to vector<8x32xf32>
    %31 = arith.negf %30 : vector<8x32xf32>
    %32 = math.exp %31 : vector<8x32xf32>
    %cst_23 = arith.constant 1.000000e+00 : f32
    %33 = vector.broadcast %cst_23 : f32 to vector<8x32xf32>
    %34 = arith.addf %33, %32 : vector<8x32xf32>
    %35 = arith.divf %33, %34 : vector<8x32xf32>
    %36 = vector.extract_strided_slice %27 {offsets = [0, 0], sizes = [8, 32], strides = [1, 1]} : vector<8x64xf32> to vector<8x32xf32>
    %37 = vector.extract_strided_slice %27 {offsets = [0, 32], sizes = [8, 32], strides = [1, 1]} : vector<8x64xf32> to vector<8x32xf32>
    %38 = arith.mulf %37, %16 : vector<8x32xf32>
    %39 = arith.mulf %36, %29 : vector<8x32xf32>
    %40 = arith.addf %38, %39 : vector<8x32xf32>
    %41 = math.tanh %40 : vector<8x32xf32>
    %42 = arith.mulf %35, %41 : vector<8x32xf32>
    %43 = arith.index_cast %c0_i32_18 : i32 to index
    %c0_24 = arith.constant 0 : index
    %c0_25 = arith.constant 0 : index
    %44 = vector.load %arg12[%43, %c0_24, %c0_25] : memref<8x8x32xf32, #tpu.memory_space<vmem>>, vector<1x8x32xf32>
    %45 = vector.shape_cast %44 : vector<1x8x32xf32> to vector<8x32xf32>
    %46 = vector.shape_cast %42 : vector<8x32xf32> to vector<1x8x32xf32>
    tpu.vector_store %arg12[%43, %c0_24, %c0_25], %46 {strides = array<i32>} : memref<8x8x32xf32, #tpu.memory_space<vmem>>, vector<1x8x32xf32>,
    %c1_i32 = arith.constant 1 : i32
    %47 = arith.index_cast %c1_i32 : i32 to index
    %c0_26 = arith.constant 0 : index
    %c0_27 = arith.constant 0 : index
    %48 = vector.load %arg13[%47, %c0_26, %c0_27] : memref<8x8x128xf32, #tpu.memory_space<vmem>>, vector<1x8x128xf32>
    %49 = vector.shape_cast %48 : vector<1x8x128xf32> to vector<8x128xf32>
    %cst_28 = arith.constant dense<0.000000e+00> : vector<8x128xf32>
    %50 = tpu.matmul %42, %4, %cst_28 {dimension_numbers = #tpu.dot_dimension_numbers<[1], [0], [0], [1], [0, 0, 1, 1], [], []>} : vector<8x32xf32>, vector<32x128xf32>, vector<8x128xf32> -> vector<8x128xf32>
    %51 = arith.addf %49, %50 : vector<8x128xf32>
    %52 = vector.extract_strided_slice %51 {offsets = [0, 0], sizes = [8, 64], strides = [1, 1]} : vector<8x128xf32> to vector<8x64xf32>
    %53 = arith.negf %52 : vector<8x64xf32>
    %54 = math.exp %53 : vector<8x64xf32>
    %cst_29 = arith.constant 1.000000e+00 : f32
    %55 = vector.broadcast %cst_29 : f32 to vector<8x64xf32>
    %56 = arith.addf %55, %54 : vector<8x64xf32>
    %57 = arith.divf %55, %56 : vector<8x64xf32>
    %58 = vector.extract_strided_slice %51 {offsets = [0, 64], sizes = [8, 32], strides = [1, 1]} : vector<8x128xf32> to vector<8x32xf32>
    %59 = math.tanh %58 : vector<8x32xf32>
    %60 = vector.extract_strided_slice %51 {offsets = [0, 96], sizes = [8, 32], strides = [1, 1]} : vector<8x128xf32> to vector<8x32xf32>
    %61 = arith.negf %60 : vector<8x32xf32>
    %62 = math.exp %61 : vector<8x32xf32>
    %cst_30 = arith.constant 1.000000e+00 : f32
    %63 = vector.broadcast %cst_30 : f32 to vector<8x32xf32>
    %64 = arith.addf %63, %62 : vector<8x32xf32>
    %65 = arith.divf %63, %64 : vector<8x32xf32>
    %66 = vector.extract_strided_slice %57 {offsets = [0, 0], sizes = [8, 32], strides = [1, 1]} : vector<8x64xf32> to vector<8x32xf32>
    %67 = vector.extract_strided_slice %57 {offsets = [0, 32], sizes = [8, 32], strides = [1, 1]} : vector<8x64xf32> to vector<8x32xf32>
    %68 = arith.mulf %67, %40 : vector<8x32xf32>
    %69 = arith.mulf %66, %59 : vector<8x32xf32>
    %70 = arith.addf %68, %69 : vector<8x32xf32>
    %71 = math.tanh %70 : vector<8x32xf32>
    %72 = arith.mulf %65, %71 : vector<8x32xf32>
    %73 = arith.index_cast %c1_i32 : i32 to index
    %c0_31 = arith.constant 0 : index
    %c0_32 = arith.constant 0 : index
    %74 = vector.load %arg12[%73, %c0_31, %c0_32] : memref<8x8x32xf32, #tpu.memory_space<vmem>>, vector<1x8x32xf32>
    %75 = vector.shape_cast %74 : vector<1x8x32xf32> to vector<8x32xf32>
    %76 = vector.shape_cast %72 : vector<8x32xf32> to vector<1x8x32xf32>
    tpu.vector_store %arg12[%73, %c0_31, %c0_32], %76 {strides = array<i32>} : memref<8x8x32xf32, #tpu.memory_space<vmem>>, vector<1x8x32xf32>,
    %c2_i32 = arith.constant 2 : i32
    %77 = arith.index_cast %c2_i32 : i32 to index
    %c0_33 = arith.constant 0 : index
    %c0_34 = arith.constant 0 : index
    %78 = vector.load %arg13[%77, %c0_33, %c0_34] : memref<8x8x128xf32, #tpu.memory_space<vmem>>, vector<1x8x128xf32>
    %79 = vector.shape_cast %78 : vector<1x8x128xf32> to vector<8x128xf32>
    %cst_35 = arith.constant dense<0.000000e+00> : vector<8x128xf32>
    %80 = tpu.matmul %72, %4, %cst_35 {dimension_numbers = #tpu.dot_dimension_numbers<[1], [0], [0], [1], [0, 0, 1, 1], [], []>} : vector<8x32xf32>, vector<32x128xf32>, vector<8x128xf32> -> vector<8x128xf32>
    %81 = arith.addf %79, %80 : vector<8x128xf32>
    %82 = vector.extract_strided_slice %81 {offsets = [0, 0], sizes = [8, 64], strides = [1, 1]} : vector<8x128xf32> to vector<8x64xf32>
    %83 = arith.negf %82 : vector<8x64xf32>
    %84 = math.exp %83 : vector<8x64xf32>
    %cst_36 = arith.constant 1.000000e+00 : f32
    %85 = vector.broadcast %cst_36 : f32 to vector<8x64xf32>
    %86 = arith.addf %85, %84 : vector<8x64xf32>
    %87 = arith.divf %85, %86 : vector<8x64xf32>
    %88 = vector.extract_strided_slice %81 {offsets = [0, 64], sizes = [8, 32], strides = [1, 1]} : vector<8x128xf32> to vector<8x32xf32>
    %89 = math.tanh %88 : vector<8x32xf32>
    %90 = vector.extract_strided_slice %81 {offsets = [0, 96], sizes = [8, 32], strides = [1, 1]} : vector<8x128xf32> to vector<8x32xf32>
    %91 = arith.negf %90 : vector<8x32xf32>
    %92 = math.exp %91 : vector<8x32xf32>
    %cst_37 = arith.constant 1.000000e+00 : f32
    %93 = vector.broadcast %cst_37 : f32 to vector<8x32xf32>
    %94 = arith.addf %93, %92 : vector<8x32xf32>
    %95 = arith.divf %93, %94 : vector<8x32xf32>
    %96 = vector.extract_strided_slice %87 {offsets = [0, 0], sizes = [8, 32], strides = [1, 1]} : vector<8x64xf32> to vector<8x32xf32>
    %97 = vector.extract_strided_slice %87 {offsets = [0, 32], sizes = [8, 32], strides = [1, 1]} : vector<8x64xf32> to vector<8x32xf32>
    %98 = arith.mulf %97, %70 : vector<8x32xf32>
    %99 = arith.mulf %96, %89 : vector<8x32xf32>
    %100 = arith.addf %98, %99 : vector<8x32xf32>
    %101 = math.tanh %100 : vector<8x32xf32>
    %102 = arith.mulf %95, %101 : vector<8x32xf32>
    %103 = arith.index_cast %c2_i32 : i32 to index
    %c0_38 = arith.constant 0 : index
    %c0_39 = arith.constant 0 : index
    %104 = vector.load %arg12[%103, %c0_38, %c0_39] : memref<8x8x32xf32, #tpu.memory_space<vmem>>, vector<1x8x32xf32>
    %105 = vector.shape_cast %104 : vector<1x8x32xf32> to vector<8x32xf32>
    %106 = vector.shape_cast %102 : vector<8x32xf32> to vector<1x8x32xf32>
    tpu.vector_store %arg12[%103, %c0_38, %c0_39], %106 {strides = array<i32>} : memref<8x8x32xf32, #tpu.memory_space<vmem>>, vector<1x8x32xf32>,
    %c3_i32 = arith.constant 3 : i32
    %107 = arith.index_cast %c3_i32 : i32 to index
    %c0_40 = arith.constant 0 : index
    %c0_41 = arith.constant 0 : index
    %108 = vector.load %arg13[%107, %c0_40, %c0_41] : memref<8x8x128xf32, #tpu.memory_space<vmem>>, vector<1x8x128xf32>
    %109 = vector.shape_cast %108 : vector<1x8x128xf32> to vector<8x128xf32>
    %cst_42 = arith.constant dense<0.000000e+00> : vector<8x128xf32>
    %110 = tpu.matmul %102, %4, %cst_42 {dimension_numbers = #tpu.dot_dimension_numbers<[1], [0], [0], [1], [0, 0, 1, 1], [], []>} : vector<8x32xf32>, vector<32x128xf32>, vector<8x128xf32> -> vector<8x128xf32>
    %111 = arith.addf %109, %110 : vector<8x128xf32>
    %112 = vector.extract_strided_slice %111 {offsets = [0, 0], sizes = [8, 64], strides = [1, 1]} : vector<8x128xf32> to vector<8x64xf32>
    %113 = arith.negf %112 : vector<8x64xf32>
    %114 = math.exp %113 : vector<8x64xf32>
    %cst_43 = arith.constant 1.000000e+00 : f32
    %115 = vector.broadcast %cst_43 : f32 to vector<8x64xf32>
    %116 = arith.addf %115, %114 : vector<8x64xf32>
    %117 = arith.divf %115, %116 : vector<8x64xf32>
    %118 = vector.extract_strided_slice %111 {offsets = [0, 64], sizes = [8, 32], strides = [1, 1]} : vector<8x128xf32> to vector<8x32xf32>
    %119 = math.tanh %118 : vector<8x32xf32>
    %120 = vector.extract_strided_slice %111 {offsets = [0, 96], sizes = [8, 32], strides = [1, 1]} : vector<8x128xf32> to vector<8x32xf32>
    %121 = arith.negf %120 : vector<8x32xf32>
    %122 = math.exp %121 : vector<8x32xf32>
    %cst_44 = arith.constant 1.000000e+00 : f32
    %123 = vector.broadcast %cst_44 : f32 to vector<8x32xf32>
    %124 = arith.addf %123, %122 : vector<8x32xf32>
    %125 = arith.divf %123, %124 : vector<8x32xf32>
    %126 = vector.extract_strided_slice %117 {offsets = [0, 0], sizes = [8, 32], strides = [1, 1]} : vector<8x64xf32> to vector<8x32xf32>
    %127 = vector.extract_strided_slice %117 {offsets = [0, 32], sizes = [8, 32], strides = [1, 1]} : vector<8x64xf32> to vector<8x32xf32>
    %128 = arith.mulf %127, %100 : vector<8x32xf32>
    %129 = arith.mulf %126, %119 : vector<8x32xf32>
    %130 = arith.addf %128, %129 : vector<8x32xf32>
    %131 = math.tanh %130 : vector<8x32xf32>
    %132 = arith.mulf %125, %131 : vector<8x32xf32>
    %133 = arith.index_cast %c3_i32 : i32 to index
    %c0_45 = arith.constant 0 : index
    %c0_46 = arith.constant 0 : index
    %134 = vector.load %arg12[%133, %c0_45, %c0_46] : memref<8x8x32xf32, #tpu.memory_space<vmem>>, vector<1x8x32xf32>
    %135 = vector.shape_cast %134 : vector<1x8x32xf32> to vector<8x32xf32>
    %136 = vector.shape_cast %132 : vector<8x32xf32> to vector<1x8x32xf32>
    tpu.vector_store %arg12[%133, %c0_45, %c0_46], %136 {strides = array<i32>} : memref<8x8x32xf32, #tpu.memory_space<vmem>>, vector<1x8x32xf32>,
    %c4_i32 = arith.constant 4 : i32
    %137 = arith.index_cast %c4_i32 : i32 to index
    %c0_47 = arith.constant 0 : index
    %c0_48 = arith.constant 0 : index
    %138 = vector.load %arg13[%137, %c0_47, %c0_48] : memref<8x8x128xf32, #tpu.memory_space<vmem>>, vector<1x8x128xf32>
    %139 = vector.shape_cast %138 : vector<1x8x128xf32> to vector<8x128xf32>
    %cst_49 = arith.constant dense<0.000000e+00> : vector<8x128xf32>
    %140 = tpu.matmul %132, %4, %cst_49 {dimension_numbers = #tpu.dot_dimension_numbers<[1], [0], [0], [1], [0, 0, 1, 1], [], []>} : vector<8x32xf32>, vector<32x128xf32>, vector<8x128xf32> -> vector<8x128xf32>
    %141 = arith.addf %139, %140 : vector<8x128xf32>
    %142 = vector.extract_strided_slice %141 {offsets = [0, 0], sizes = [8, 64], strides = [1, 1]} : vector<8x128xf32> to vector<8x64xf32>
    %143 = arith.negf %142 : vector<8x64xf32>
    %144 = math.exp %143 : vector<8x64xf32>
    %cst_50 = arith.constant 1.000000e+00 : f32
    %145 = vector.broadcast %cst_50 : f32 to vector<8x64xf32>
    %146 = arith.addf %145, %144 : vector<8x64xf32>
    %147 = arith.divf %145, %146 : vector<8x64xf32>
    %148 = vector.extract_strided_slice %141 {offsets = [0, 64], sizes = [8, 32], strides = [1, 1]} : vector<8x128xf32> to vector<8x32xf32>
    %149 = math.tanh %148 : vector<8x32xf32>
    %150 = vector.extract_strided_slice %141 {offsets = [0, 96], sizes = [8, 32], strides = [1, 1]} : vector<8x128xf32> to vector<8x32xf32>
    %151 = arith.negf %150 : vector<8x32xf32>
    %152 = math.exp %151 : vector<8x32xf32>
    %cst_51 = arith.constant 1.000000e+00 : f32
    %153 = vector.broadcast %cst_51 : f32 to vector<8x32xf32>
    %154 = arith.addf %153, %152 : vector<8x32xf32>
    %155 = arith.divf %153, %154 : vector<8x32xf32>
    %156 = vector.extract_strided_slice %147 {offsets = [0, 0], sizes = [8, 32], strides = [1, 1]} : vector<8x64xf32> to vector<8x32xf32>
    %157 = vector.extract_strided_slice %147 {offsets = [0, 32], sizes = [8, 32], strides = [1, 1]} : vector<8x64xf32> to vector<8x32xf32>
    %158 = arith.mulf %157, %130 : vector<8x32xf32>
    %159 = arith.mulf %156, %149 : vector<8x32xf32>
    %160 = arith.addf %158, %159 : vector<8x32xf32>
    %161 = math.tanh %160 : vector<8x32xf32>
    %162 = arith.mulf %155, %161 : vector<8x32xf32>
    %163 = arith.index_cast %c4_i32 : i32 to index
    %c0_52 = arith.constant 0 : index
    %c0_53 = arith.constant 0 : index
    %164 = vector.load %arg12[%163, %c0_52, %c0_53] : memref<8x8x32xf32, #tpu.memory_space<vmem>>, vector<1x8x32xf32>
    %165 = vector.shape_cast %164 : vector<1x8x32xf32> to vector<8x32xf32>
    %166 = vector.shape_cast %162 : vector<8x32xf32> to vector<1x8x32xf32>
    tpu.vector_store %arg12[%163, %c0_52, %c0_53], %166 {strides = array<i32>} : memref<8x8x32xf32, #tpu.memory_space<vmem>>, vector<1x8x32xf32>,
    %c5_i32 = arith.constant 5 : i32
    %167 = arith.index_cast %c5_i32 : i32 to index
    %c0_54 = arith.constant 0 : index
    %c0_55 = arith.constant 0 : index
    %168 = vector.load %arg13[%167, %c0_54, %c0_55] : memref<8x8x128xf32, #tpu.memory_space<vmem>>, vector<1x8x128xf32>
    %169 = vector.shape_cast %168 : vector<1x8x128xf32> to vector<8x128xf32>
    %cst_56 = arith.constant dense<0.000000e+00> : vector<8x128xf32>
    %170 = tpu.matmul %162, %4, %cst_56 {dimension_numbers = #tpu.dot_dimension_numbers<[1], [0], [0], [1], [0, 0, 1, 1], [], []>} : vector<8x32xf32>, vector<32x128xf32>, vector<8x128xf32> -> vector<8x128xf32>
    %171 = arith.addf %169, %170 : vector<8x128xf32>
    %172 = vector.extract_strided_slice %171 {offsets = [0, 0], sizes = [8, 64], strides = [1, 1]} : vector<8x128xf32> to vector<8x64xf32>
    %173 = arith.negf %172 : vector<8x64xf32>
    %174 = math.exp %173 : vector<8x64xf32>
    %cst_57 = arith.constant 1.000000e+00 : f32
    %175 = vector.broadcast %cst_57 : f32 to vector<8x64xf32>
    %176 = arith.addf %175, %174 : vector<8x64xf32>
    %177 = arith.divf %175, %176 : vector<8x64xf32>
    %178 = vector.extract_strided_slice %171 {offsets = [0, 64], sizes = [8, 32], strides = [1, 1]} : vector<8x128xf32> to vector<8x32xf32>
    %179 = math.tanh %178 : vector<8x32xf32>
    %180 = vector.extract_strided_slice %171 {offsets = [0, 96], sizes = [8, 32], strides = [1, 1]} : vector<8x128xf32> to vector<8x32xf32>
    %181 = arith.negf %180 : vector<8x32xf32>
    %182 = math.exp %181 : vector<8x32xf32>
    %cst_58 = arith.constant 1.000000e+00 : f32
    %183 = vector.broadcast %cst_58 : f32 to vector<8x32xf32>
    %184 = arith.addf %183, %182 : vector<8x32xf32>
    %185 = arith.divf %183, %184 : vector<8x32xf32>
    %186 = vector.extract_strided_slice %177 {offsets = [0, 0], sizes = [8, 32], strides = [1, 1]} : vector<8x64xf32> to vector<8x32xf32>
    %187 = vector.extract_strided_slice %177 {offsets = [0, 32], sizes = [8, 32], strides = [1, 1]} : vector<8x64xf32> to vector<8x32xf32>
    %188 = arith.mulf %187, %160 : vector<8x32xf32>
    %189 = arith.mulf %186, %179 : vector<8x32xf32>
    %190 = arith.addf %188, %189 : vector<8x32xf32>
    %191 = math.tanh %190 : vector<8x32xf32>
    %192 = arith.mulf %185, %191 : vector<8x32xf32>
    %193 = arith.index_cast %c5_i32 : i32 to index
    %c0_59 = arith.constant 0 : index
    %c0_60 = arith.constant 0 : index
    %194 = vector.load %arg12[%193, %c0_59, %c0_60] : memref<8x8x32xf32, #tpu.memory_space<vmem>>, vector<1x8x32xf32>
    %195 = vector.shape_cast %194 : vector<1x8x32xf32> to vector<8x32xf32>
    %196 = vector.shape_cast %192 : vector<8x32xf32> to vector<1x8x32xf32>
    tpu.vector_store %arg12[%193, %c0_59, %c0_60], %196 {strides = array<i32>} : memref<8x8x32xf32, #tpu.memory_space<vmem>>, vector<1x8x32xf32>,
    %c6_i32 = arith.constant 6 : i32
    %197 = arith.index_cast %c6_i32 : i32 to index
    %c0_61 = arith.constant 0 : index
    %c0_62 = arith.constant 0 : index
    %198 = vector.load %arg13[%197, %c0_61, %c0_62] : memref<8x8x128xf32, #tpu.memory_space<vmem>>, vector<1x8x128xf32>
    %199 = vector.shape_cast %198 : vector<1x8x128xf32> to vector<8x128xf32>
    %cst_63 = arith.constant dense<0.000000e+00> : vector<8x128xf32>
    %200 = tpu.matmul %192, %4, %cst_63 {dimension_numbers = #tpu.dot_dimension_numbers<[1], [0], [0], [1], [0, 0, 1, 1], [], []>} : vector<8x32xf32>, vector<32x128xf32>, vector<8x128xf32> -> vector<8x128xf32>
    %201 = arith.addf %199, %200 : vector<8x128xf32>
    %202 = vector.extract_strided_slice %201 {offsets = [0, 0], sizes = [8, 64], strides = [1, 1]} : vector<8x128xf32> to vector<8x64xf32>
    %203 = arith.negf %202 : vector<8x64xf32>
    %204 = math.exp %203 : vector<8x64xf32>
    %cst_64 = arith.constant 1.000000e+00 : f32
    %205 = vector.broadcast %cst_64 : f32 to vector<8x64xf32>
    %206 = arith.addf %205, %204 : vector<8x64xf32>
    %207 = arith.divf %205, %206 : vector<8x64xf32>
    %208 = vector.extract_strided_slice %201 {offsets = [0, 64], sizes = [8, 32], strides = [1, 1]} : vector<8x128xf32> to vector<8x32xf32>
    %209 = math.tanh %208 : vector<8x32xf32>
    %210 = vector.extract_strided_slice %201 {offsets = [0, 96], sizes = [8, 32], strides = [1, 1]} : vector<8x128xf32> to vector<8x32xf32>
    %211 = arith.negf %210 : vector<8x32xf32>
    %212 = math.exp %211 : vector<8x32xf32>
    %cst_65 = arith.constant 1.000000e+00 : f32
    %213 = vector.broadcast %cst_65 : f32 to vector<8x32xf32>
    %214 = arith.addf %213, %212 : vector<8x32xf32>
    %215 = arith.divf %213, %214 : vector<8x32xf32>
    %216 = vector.extract_strided_slice %207 {offsets = [0, 0], sizes = [8, 32], strides = [1, 1]} : vector<8x64xf32> to vector<8x32xf32>
    %217 = vector.extract_strided_slice %207 {offsets = [0, 32], sizes = [8, 32], strides = [1, 1]} : vector<8x64xf32> to vector<8x32xf32>
    %218 = arith.mulf %217, %190 : vector<8x32xf32>
    %219 = arith.mulf %216, %209 : vector<8x32xf32>
    %220 = arith.addf %218, %219 : vector<8x32xf32>
    %221 = math.tanh %220 : vector<8x32xf32>
    %222 = arith.mulf %215, %221 : vector<8x32xf32>
    %223 = arith.index_cast %c6_i32 : i32 to index
    %c0_66 = arith.constant 0 : index
    %c0_67 = arith.constant 0 : index
    %224 = vector.load %arg12[%223, %c0_66, %c0_67] : memref<8x8x32xf32, #tpu.memory_space<vmem>>, vector<1x8x32xf32>
    %225 = vector.shape_cast %224 : vector<1x8x32xf32> to vector<8x32xf32>
    %226 = vector.shape_cast %222 : vector<8x32xf32> to vector<1x8x32xf32>
    tpu.vector_store %arg12[%223, %c0_66, %c0_67], %226 {strides = array<i32>} : memref<8x8x32xf32, #tpu.memory_space<vmem>>, vector<1x8x32xf32>,
    %c7_i32 = arith.constant 7 : i32
    %227 = arith.index_cast %c7_i32 : i32 to index
    %c0_68 = arith.constant 0 : index
    %c0_69 = arith.constant 0 : index
    %228 = vector.load %arg13[%227, %c0_68, %c0_69] : memref<8x8x128xf32, #tpu.memory_space<vmem>>, vector<1x8x128xf32>
    %229 = vector.shape_cast %228 : vector<1x8x128xf32> to vector<8x128xf32>
    %cst_70 = arith.constant dense<0.000000e+00> : vector<8x128xf32>
    %230 = tpu.matmul %222, %4, %cst_70 {dimension_numbers = #tpu.dot_dimension_numbers<[1], [0], [0], [1], [0, 0, 1, 1], [], []>} : vector<8x32xf32>, vector<32x128xf32>, vector<8x128xf32> -> vector<8x128xf32>
    %231 = arith.addf %229, %230 : vector<8x128xf32>
    %232 = vector.extract_strided_slice %231 {offsets = [0, 0], sizes = [8, 64], strides = [1, 1]} : vector<8x128xf32> to vector<8x64xf32>
    %233 = arith.negf %232 : vector<8x64xf32>
    %234 = math.exp %233 : vector<8x64xf32>
    %cst_71 = arith.constant 1.000000e+00 : f32
    %235 = vector.broadcast %cst_71 : f32 to vector<8x64xf32>
    %236 = arith.addf %235, %234 : vector<8x64xf32>
    %237 = arith.divf %235, %236 : vector<8x64xf32>
    %238 = vector.extract_strided_slice %231 {offsets = [0, 64], sizes = [8, 32], strides = [1, 1]} : vector<8x128xf32> to vector<8x32xf32>
    %239 = math.tanh %238 : vector<8x32xf32>
    %240 = vector.extract_strided_slice %231 {offsets = [0, 96], sizes = [8, 32], strides = [1, 1]} : vector<8x128xf32> to vector<8x32xf32>
    %241 = arith.negf %240 : vector<8x32xf32>
    %242 = math.exp %241 : vector<8x32xf32>
    %cst_72 = arith.constant 1.000000e+00 : f32
    %243 = vector.broadcast %cst_72 : f32 to vector<8x32xf32>
    %244 = arith.addf %243, %242 : vector<8x32xf32>
    %245 = arith.divf %243, %244 : vector<8x32xf32>
    %246 = vector.extract_strided_slice %237 {offsets = [0, 0], sizes = [8, 32], strides = [1, 1]} : vector<8x64xf32> to vector<8x32xf32>
    %247 = vector.extract_strided_slice %237 {offsets = [0, 32], sizes = [8, 32], strides = [1, 1]} : vector<8x64xf32> to vector<8x32xf32>
    %248 = arith.mulf %247, %220 : vector<8x32xf32>
    %249 = arith.mulf %246, %239 : vector<8x32xf32>
    %250 = arith.addf %248, %249 : vector<8x32xf32>
    %251 = math.tanh %250 : vector<8x32xf32>
    %252 = arith.mulf %245, %251 : vector<8x32xf32>
    %253 = arith.index_cast %c7_i32 : i32 to index
    %c0_73 = arith.constant 0 : index
    %c0_74 = arith.constant 0 : index
    %254 = vector.load %arg12[%253, %c0_73, %c0_74] : memref<8x8x32xf32, #tpu.memory_space<vmem>>, vector<1x8x32xf32>
    %255 = vector.shape_cast %254 : vector<1x8x32xf32> to vector<8x32xf32>
    %256 = vector.shape_cast %252 : vector<8x32xf32> to vector<1x8x32xf32>
    tpu.vector_store %arg12[%253, %c0_73, %c0_74], %256 {strides = array<i32>} : memref<8x8x32xf32, #tpu.memory_space<vmem>>, vector<1x8x32xf32>,
    %c8_i32 = arith.constant 8 : i32
    %c0_75 = arith.constant 0 : index
    %c0_76 = arith.constant 0 : index
    %c0_77 = arith.constant 0 : index
    %257 = vector.load %arg10[%c0_75, %c0_76, %c0_77] : memref<2x8x32xf32, #tpu.memory_space<vmem>>, vector<1x8x32xf32>
    %258 = vector.shape_cast %257 : vector<1x8x32xf32> to vector<8x32xf32>
    %259 = vector.shape_cast %252 : vector<8x32xf32> to vector<1x8x32xf32>
    tpu.vector_store %arg10[%c0_75, %c0_76, %c0_77], %259 {strides = array<i32>} : memref<2x8x32xf32, #tpu.memory_space<vmem>>, vector<1x8x32xf32>,
    %c0_78 = arith.constant 0 : index
    %c0_79 = arith.constant 0 : index
    %c0_80 = arith.constant 0 : index
    %260 = vector.load %arg11[%c0_78, %c0_79, %c0_80] : memref<2x8x32xf32, #tpu.memory_space<vmem>>, vector<1x8x32xf32>
    %261 = vector.shape_cast %260 : vector<1x8x32xf32> to vector<8x32xf32>
    %262 = vector.shape_cast %250 : vector<8x32xf32> to vector<1x8x32xf32>
    tpu.vector_store %arg11[%c0_78, %c0_79, %c0_80], %262 {strides = array<i32>} : memref<2x8x32xf32, #tpu.memory_space<vmem>>, vector<1x8x32xf32>,
    %c0_81 = arith.constant 0 : index
    %c0_82 = arith.constant 0 : index
    %263 = vector.load %arg6[%c0_81, %c0_82] : memref<32x128xf32, #tpu.memory_space<vmem>>, vector<32x128xf32>
    %c0_83 = arith.constant 0 : index
    %c0_84 = arith.constant 0 : index
    %264 = vector.load %arg7[%c0_83, %c0_84] : memref<32x128xf32, #tpu.memory_space<vmem>>, vector<32x128xf32>
    %c0_85 = arith.constant 0 : index
    %c0_86 = arith.constant 0 : index
    %265 = vector.load %arg8[%c0_85, %c0_86] : memref<1x128xf32, #tpu.memory_space<vmem>>, vector<1x128xf32>
    %c0_87 = arith.constant 0 : index
    %c0_88 = arith.constant 0 : index
    %c0_89 = arith.constant 0 : index
    %266 = vector.load %arg12[%c0_87, %c0_88, %c0_89] : memref<8x8x32xf32, #tpu.memory_space<vmem>>, vector<8x8x32xf32>
    %267 = vector.shape_cast %266 : vector<8x8x32xf32> to vector<64x32xf32>
    %cst_90 = arith.constant dense<0.000000e+00> : vector<64x128xf32>
    %268 = tpu.matmul %267, %263, %cst_90 {dimension_numbers = #tpu.dot_dimension_numbers<[1], [0], [0], [1], [0, 0, 1, 1], [], []>} : vector<64x32xf32>, vector<32x128xf32>, vector<64x128xf32> -> vector<64x128xf32>
    %269 = vector.broadcast %265 : vector<1x128xf32> to vector<64x128xf32>
    %270 = arith.addf %268, %269 : vector<64x128xf32>
    %271 = vector.shape_cast %270 : vector<64x128xf32> to vector<8x8x128xf32>
    %c0_91 = arith.constant 0 : index
    %c0_92 = arith.constant 0 : index
    %c0_93 = arith.constant 0 : index
    %272 = vector.load %arg13[%c0_91, %c0_92, %c0_93] : memref<8x8x128xf32, #tpu.memory_space<vmem>>, vector<8x8x128xf32>
    tpu.vector_store %arg13[%c0_91, %c0_92, %c0_93], %271 {strides = array<i32>} : memref<8x8x128xf32, #tpu.memory_space<vmem>>, vector<8x8x128xf32>,
    %c1 = arith.constant 1 : index
    %c0_94 = arith.constant 0 : index
    %c0_95 = arith.constant 0 : index
    %273 = vector.load %arg10[%c1, %c0_94, %c0_95] : memref<2x8x32xf32, #tpu.memory_space<vmem>>, vector<1x8x32xf32>
    %274 = vector.shape_cast %273 : vector<1x8x32xf32> to vector<8x32xf32>
    %c1_96 = arith.constant 1 : index
    %c0_97 = arith.constant 0 : index
    %c0_98 = arith.constant 0 : index
    %275 = vector.load %arg11[%c1_96, %c0_97, %c0_98] : memref<2x8x32xf32, #tpu.memory_space<vmem>>, vector<1x8x32xf32>
    %276 = vector.shape_cast %275 : vector<1x8x32xf32> to vector<8x32xf32>
    %c0_i32_99 = arith.constant 0 : i32
    %277 = arith.index_cast %c0_i32_99 : i32 to index
    %c0_100 = arith.constant 0 : index
    %c0_101 = arith.constant 0 : index
    %278 = vector.load %arg13[%277, %c0_100, %c0_101] : memref<8x8x128xf32, #tpu.memory_space<vmem>>, vector<1x8x128xf32>
    %279 = vector.shape_cast %278 : vector<1x8x128xf32> to vector<8x128xf32>
    %cst_102 = arith.constant dense<0.000000e+00> : vector<8x128xf32>
    %280 = tpu.matmul %274, %264, %cst_102 {dimension_numbers = #tpu.dot_dimension_numbers<[1], [0], [0], [1], [0, 0, 1, 1], [], []>} : vector<8x32xf32>, vector<32x128xf32>, vector<8x128xf32> -> vector<8x128xf32>
    %281 = arith.addf %279, %280 : vector<8x128xf32>
    %282 = vector.extract_strided_slice %281 {offsets = [0, 0], sizes = [8, 64], strides = [1, 1]} : vector<8x128xf32> to vector<8x64xf32>
    %283 = arith.negf %282 : vector<8x64xf32>
    %284 = math.exp %283 : vector<8x64xf32>
    %cst_103 = arith.constant 1.000000e+00 : f32
    %285 = vector.broadcast %cst_103 : f32 to vector<8x64xf32>
    %286 = arith.addf %285, %284 : vector<8x64xf32>
    %287 = arith.divf %285, %286 : vector<8x64xf32>
    %288 = vector.extract_strided_slice %281 {offsets = [0, 64], sizes = [8, 32], strides = [1, 1]} : vector<8x128xf32> to vector<8x32xf32>
    %289 = math.tanh %288 : vector<8x32xf32>
    %290 = vector.extract_strided_slice %281 {offsets = [0, 96], sizes = [8, 32], strides = [1, 1]} : vector<8x128xf32> to vector<8x32xf32>
    %291 = arith.negf %290 : vector<8x32xf32>
    %292 = math.exp %291 : vector<8x32xf32>
    %cst_104 = arith.constant 1.000000e+00 : f32
    %293 = vector.broadcast %cst_104 : f32 to vector<8x32xf32>
    %294 = arith.addf %293, %292 : vector<8x32xf32>
    %295 = arith.divf %293, %294 : vector<8x32xf32>
    %296 = vector.extract_strided_slice %287 {offsets = [0, 0], sizes = [8, 32], strides = [1, 1]} : vector<8x64xf32> to vector<8x32xf32>
    %297 = vector.extract_strided_slice %287 {offsets = [0, 32], sizes = [8, 32], strides = [1, 1]} : vector<8x64xf32> to vector<8x32xf32>
    %298 = arith.mulf %297, %276 : vector<8x32xf32>
    %299 = arith.mulf %296, %289 : vector<8x32xf32>
    %300 = arith.addf %298, %299 : vector<8x32xf32>
    %301 = math.tanh %300 : vector<8x32xf32>
    %302 = arith.mulf %295, %301 : vector<8x32xf32>
    %c1_i32_105 = arith.constant 1 : i32
    %303 = arith.index_cast %c1_i32_105 : i32 to index
    %c0_106 = arith.constant 0 : index
    %c0_107 = arith.constant 0 : index
    %304 = vector.load %arg13[%303, %c0_106, %c0_107] : memref<8x8x128xf32, #tpu.memory_space<vmem>>, vector<1x8x128xf32>
    %305 = vector.shape_cast %304 : vector<1x8x128xf32> to vector<8x128xf32>
    %cst_108 = arith.constant dense<0.000000e+00> : vector<8x128xf32>
    %306 = tpu.matmul %302, %264, %cst_108 {dimension_numbers = #tpu.dot_dimension_numbers<[1], [0], [0], [1], [0, 0, 1, 1], [], []>} : vector<8x32xf32>, vector<32x128xf32>, vector<8x128xf32> -> vector<8x128xf32>
    %307 = arith.addf %305, %306 : vector<8x128xf32>
    %308 = vector.extract_strided_slice %307 {offsets = [0, 0], sizes = [8, 64], strides = [1, 1]} : vector<8x128xf32> to vector<8x64xf32>
    %309 = arith.negf %308 : vector<8x64xf32>
    %310 = math.exp %309 : vector<8x64xf32>
    %cst_109 = arith.constant 1.000000e+00 : f32
    %311 = vector.broadcast %cst_109 : f32 to vector<8x64xf32>
    %312 = arith.addf %311, %310 : vector<8x64xf32>
    %313 = arith.divf %311, %312 : vector<8x64xf32>
    %314 = vector.extract_strided_slice %307 {offsets = [0, 64], sizes = [8, 32], strides = [1, 1]} : vector<8x128xf32> to vector<8x32xf32>
    %315 = math.tanh %314 : vector<8x32xf32>
    %316 = vector.extract_strided_slice %307 {offsets = [0, 96], sizes = [8, 32], strides = [1, 1]} : vector<8x128xf32> to vector<8x32xf32>
    %317 = arith.negf %316 : vector<8x32xf32>
    %318 = math.exp %317 : vector<8x32xf32>
    %cst_110 = arith.constant 1.000000e+00 : f32
    %319 = vector.broadcast %cst_110 : f32 to vector<8x32xf32>
    %320 = arith.addf %319, %318 : vector<8x32xf32>
    %321 = arith.divf %319, %320 : vector<8x32xf32>
    %322 = vector.extract_strided_slice %313 {offsets = [0, 0], sizes = [8, 32], strides = [1, 1]} : vector<8x64xf32> to vector<8x32xf32>
    %323 = vector.extract_strided_slice %313 {offsets = [0, 32], sizes = [8, 32], strides = [1, 1]} : vector<8x64xf32> to vector<8x32xf32>
    %324 = arith.mulf %323, %300 : vector<8x32xf32>
    %325 = arith.mulf %322, %315 : vector<8x32xf32>
    %326 = arith.addf %324, %325 : vector<8x32xf32>
    %327 = math.tanh %326 : vector<8x32xf32>
    %328 = arith.mulf %321, %327 : vector<8x32xf32>
    %c2_i32_111 = arith.constant 2 : i32
    %329 = arith.index_cast %c2_i32_111 : i32 to index
    %c0_112 = arith.constant 0 : index
    %c0_113 = arith.constant 0 : index
    %330 = vector.load %arg13[%329, %c0_112, %c0_113] : memref<8x8x128xf32, #tpu.memory_space<vmem>>, vector<1x8x128xf32>
    %331 = vector.shape_cast %330 : vector<1x8x128xf32> to vector<8x128xf32>
    %cst_114 = arith.constant dense<0.000000e+00> : vector<8x128xf32>
    %332 = tpu.matmul %328, %264, %cst_114 {dimension_numbers = #tpu.dot_dimension_numbers<[1], [0], [0], [1], [0, 0, 1, 1], [], []>} : vector<8x32xf32>, vector<32x128xf32>, vector<8x128xf32> -> vector<8x128xf32>
    %333 = arith.addf %331, %332 : vector<8x128xf32>
    %334 = vector.extract_strided_slice %333 {offsets = [0, 0], sizes = [8, 64], strides = [1, 1]} : vector<8x128xf32> to vector<8x64xf32>
    %335 = arith.negf %334 : vector<8x64xf32>
    %336 = math.exp %335 : vector<8x64xf32>
    %cst_115 = arith.constant 1.000000e+00 : f32
    %337 = vector.broadcast %cst_115 : f32 to vector<8x64xf32>
    %338 = arith.addf %337, %336 : vector<8x64xf32>
    %339 = arith.divf %337, %338 : vector<8x64xf32>
    %340 = vector.extract_strided_slice %333 {offsets = [0, 64], sizes = [8, 32], strides = [1, 1]} : vector<8x128xf32> to vector<8x32xf32>
    %341 = math.tanh %340 : vector<8x32xf32>
    %342 = vector.extract_strided_slice %333 {offsets = [0, 96], sizes = [8, 32], strides = [1, 1]} : vector<8x128xf32> to vector<8x32xf32>
    %343 = arith.negf %342 : vector<8x32xf32>
    %344 = math.exp %343 : vector<8x32xf32>
    %cst_116 = arith.constant 1.000000e+00 : f32
    %345 = vector.broadcast %cst_116 : f32 to vector<8x32xf32>
    %346 = arith.addf %345, %344 : vector<8x32xf32>
    %347 = arith.divf %345, %346 : vector<8x32xf32>
    %348 = vector.extract_strided_slice %339 {offsets = [0, 0], sizes = [8, 32], strides = [1, 1]} : vector<8x64xf32> to vector<8x32xf32>
    %349 = vector.extract_strided_slice %339 {offsets = [0, 32], sizes = [8, 32], strides = [1, 1]} : vector<8x64xf32> to vector<8x32xf32>
    %350 = arith.mulf %349, %326 : vector<8x32xf32>
    %351 = arith.mulf %348, %341 : vector<8x32xf32>
    %352 = arith.addf %350, %351 : vector<8x32xf32>
    %353 = math.tanh %352 : vector<8x32xf32>
    %354 = arith.mulf %347, %353 : vector<8x32xf32>
    %c3_i32_117 = arith.constant 3 : i32
    %355 = arith.index_cast %c3_i32_117 : i32 to index
    %c0_118 = arith.constant 0 : index
    %c0_119 = arith.constant 0 : index
    %356 = vector.load %arg13[%355, %c0_118, %c0_119] : memref<8x8x128xf32, #tpu.memory_space<vmem>>, vector<1x8x128xf32>
    %357 = vector.shape_cast %356 : vector<1x8x128xf32> to vector<8x128xf32>
    %cst_120 = arith.constant dense<0.000000e+00> : vector<8x128xf32>
    %358 = tpu.matmul %354, %264, %cst_120 {dimension_numbers = #tpu.dot_dimension_numbers<[1], [0], [0], [1], [0, 0, 1, 1], [], []>} : vector<8x32xf32>, vector<32x128xf32>, vector<8x128xf32> -> vector<8x128xf32>
    %359 = arith.addf %357, %358 : vector<8x128xf32>
    %360 = vector.extract_strided_slice %359 {offsets = [0, 0], sizes = [8, 64], strides = [1, 1]} : vector<8x128xf32> to vector<8x64xf32>
    %361 = arith.negf %360 : vector<8x64xf32>
    %362 = math.exp %361 : vector<8x64xf32>
    %cst_121 = arith.constant 1.000000e+00 : f32
    %363 = vector.broadcast %cst_121 : f32 to vector<8x64xf32>
    %364 = arith.addf %363, %362 : vector<8x64xf32>
    %365 = arith.divf %363, %364 : vector<8x64xf32>
    %366 = vector.extract_strided_slice %359 {offsets = [0, 64], sizes = [8, 32], strides = [1, 1]} : vector<8x128xf32> to vector<8x32xf32>
    %367 = math.tanh %366 : vector<8x32xf32>
    %368 = vector.extract_strided_slice %359 {offsets = [0, 96], sizes = [8, 32], strides = [1, 1]} : vector<8x128xf32> to vector<8x32xf32>
    %369 = arith.negf %368 : vector<8x32xf32>
    %370 = math.exp %369 : vector<8x32xf32>
    %cst_122 = arith.constant 1.000000e+00 : f32
    %371 = vector.broadcast %cst_122 : f32 to vector<8x32xf32>
    %372 = arith.addf %371, %370 : vector<8x32xf32>
    %373 = arith.divf %371, %372 : vector<8x32xf32>
    %374 = vector.extract_strided_slice %365 {offsets = [0, 0], sizes = [8, 32], strides = [1, 1]} : vector<8x64xf32> to vector<8x32xf32>
    %375 = vector.extract_strided_slice %365 {offsets = [0, 32], sizes = [8, 32], strides = [1, 1]} : vector<8x64xf32> to vector<8x32xf32>
    %376 = arith.mulf %375, %352 : vector<8x32xf32>
    %377 = arith.mulf %374, %367 : vector<8x32xf32>
    %378 = arith.addf %376, %377 : vector<8x32xf32>
    %379 = math.tanh %378 : vector<8x32xf32>
    %380 = arith.mulf %373, %379 : vector<8x32xf32>
    %c4_i32_123 = arith.constant 4 : i32
    %381 = arith.index_cast %c4_i32_123 : i32 to index
    %c0_124 = arith.constant 0 : index
    %c0_125 = arith.constant 0 : index
    %382 = vector.load %arg13[%381, %c0_124, %c0_125] : memref<8x8x128xf32, #tpu.memory_space<vmem>>, vector<1x8x128xf32>
    %383 = vector.shape_cast %382 : vector<1x8x128xf32> to vector<8x128xf32>
    %cst_126 = arith.constant dense<0.000000e+00> : vector<8x128xf32>
    %384 = tpu.matmul %380, %264, %cst_126 {dimension_numbers = #tpu.dot_dimension_numbers<[1], [0], [0], [1], [0, 0, 1, 1], [], []>} : vector<8x32xf32>, vector<32x128xf32>, vector<8x128xf32> -> vector<8x128xf32>
    %385 = arith.addf %383, %384 : vector<8x128xf32>
    %386 = vector.extract_strided_slice %385 {offsets = [0, 0], sizes = [8, 64], strides = [1, 1]} : vector<8x128xf32> to vector<8x64xf32>
    %387 = arith.negf %386 : vector<8x64xf32>
    %388 = math.exp %387 : vector<8x64xf32>
    %cst_127 = arith.constant 1.000000e+00 : f32
    %389 = vector.broadcast %cst_127 : f32 to vector<8x64xf32>
    %390 = arith.addf %389, %388 : vector<8x64xf32>
    %391 = arith.divf %389, %390 : vector<8x64xf32>
    %392 = vector.extract_strided_slice %385 {offsets = [0, 64], sizes = [8, 32], strides = [1, 1]} : vector<8x128xf32> to vector<8x32xf32>
    %393 = math.tanh %392 : vector<8x32xf32>
    %394 = vector.extract_strided_slice %385 {offsets = [0, 96], sizes = [8, 32], strides = [1, 1]} : vector<8x128xf32> to vector<8x32xf32>
    %395 = arith.negf %394 : vector<8x32xf32>
    %396 = math.exp %395 : vector<8x32xf32>
    %cst_128 = arith.constant 1.000000e+00 : f32
    %397 = vector.broadcast %cst_128 : f32 to vector<8x32xf32>
    %398 = arith.addf %397, %396 : vector<8x32xf32>
    %399 = arith.divf %397, %398 : vector<8x32xf32>
    %400 = vector.extract_strided_slice %391 {offsets = [0, 0], sizes = [8, 32], strides = [1, 1]} : vector<8x64xf32> to vector<8x32xf32>
    %401 = vector.extract_strided_slice %391 {offsets = [0, 32], sizes = [8, 32], strides = [1, 1]} : vector<8x64xf32> to vector<8x32xf32>
    %402 = arith.mulf %401, %378 : vector<8x32xf32>
    %403 = arith.mulf %400, %393 : vector<8x32xf32>
    %404 = arith.addf %402, %403 : vector<8x32xf32>
    %405 = math.tanh %404 : vector<8x32xf32>
    %406 = arith.mulf %399, %405 : vector<8x32xf32>
    %c5_i32_129 = arith.constant 5 : i32
    %407 = arith.index_cast %c5_i32_129 : i32 to index
    %c0_130 = arith.constant 0 : index
    %c0_131 = arith.constant 0 : index
    %408 = vector.load %arg13[%407, %c0_130, %c0_131] : memref<8x8x128xf32, #tpu.memory_space<vmem>>, vector<1x8x128xf32>
    %409 = vector.shape_cast %408 : vector<1x8x128xf32> to vector<8x128xf32>
    %cst_132 = arith.constant dense<0.000000e+00> : vector<8x128xf32>
    %410 = tpu.matmul %406, %264, %cst_132 {dimension_numbers = #tpu.dot_dimension_numbers<[1], [0], [0], [1], [0, 0, 1, 1], [], []>} : vector<8x32xf32>, vector<32x128xf32>, vector<8x128xf32> -> vector<8x128xf32>
    %411 = arith.addf %409, %410 : vector<8x128xf32>
    %412 = vector.extract_strided_slice %411 {offsets = [0, 0], sizes = [8, 64], strides = [1, 1]} : vector<8x128xf32> to vector<8x64xf32>
    %413 = arith.negf %412 : vector<8x64xf32>
    %414 = math.exp %413 : vector<8x64xf32>
    %cst_133 = arith.constant 1.000000e+00 : f32
    %415 = vector.broadcast %cst_133 : f32 to vector<8x64xf32>
    %416 = arith.addf %415, %414 : vector<8x64xf32>
    %417 = arith.divf %415, %416 : vector<8x64xf32>
    %418 = vector.extract_strided_slice %411 {offsets = [0, 64], sizes = [8, 32], strides = [1, 1]} : vector<8x128xf32> to vector<8x32xf32>
    %419 = math.tanh %418 : vector<8x32xf32>
    %420 = vector.extract_strided_slice %411 {offsets = [0, 96], sizes = [8, 32], strides = [1, 1]} : vector<8x128xf32> to vector<8x32xf32>
    %421 = arith.negf %420 : vector<8x32xf32>
    %422 = math.exp %421 : vector<8x32xf32>
    %cst_134 = arith.constant 1.000000e+00 : f32
    %423 = vector.broadcast %cst_134 : f32 to vector<8x32xf32>
    %424 = arith.addf %423, %422 : vector<8x32xf32>
    %425 = arith.divf %423, %424 : vector<8x32xf32>
    %426 = vector.extract_strided_slice %417 {offsets = [0, 0], sizes = [8, 32], strides = [1, 1]} : vector<8x64xf32> to vector<8x32xf32>
    %427 = vector.extract_strided_slice %417 {offsets = [0, 32], sizes = [8, 32], strides = [1, 1]} : vector<8x64xf32> to vector<8x32xf32>
    %428 = arith.mulf %427, %404 : vector<8x32xf32>
    %429 = arith.mulf %426, %419 : vector<8x32xf32>
    %430 = arith.addf %428, %429 : vector<8x32xf32>
    %431 = math.tanh %430 : vector<8x32xf32>
    %432 = arith.mulf %425, %431 : vector<8x32xf32>
    %c6_i32_135 = arith.constant 6 : i32
    %433 = arith.index_cast %c6_i32_135 : i32 to index
    %c0_136 = arith.constant 0 : index
    %c0_137 = arith.constant 0 : index
    %434 = vector.load %arg13[%433, %c0_136, %c0_137] : memref<8x8x128xf32, #tpu.memory_space<vmem>>, vector<1x8x128xf32>
    %435 = vector.shape_cast %434 : vector<1x8x128xf32> to vector<8x128xf32>
    %cst_138 = arith.constant dense<0.000000e+00> : vector<8x128xf32>
    %436 = tpu.matmul %432, %264, %cst_138 {dimension_numbers = #tpu.dot_dimension_numbers<[1], [0], [0], [1], [0, 0, 1, 1], [], []>} : vector<8x32xf32>, vector<32x128xf32>, vector<8x128xf32> -> vector<8x128xf32>
    %437 = arith.addf %435, %436 : vector<8x128xf32>
    %438 = vector.extract_strided_slice %437 {offsets = [0, 0], sizes = [8, 64], strides = [1, 1]} : vector<8x128xf32> to vector<8x64xf32>
    %439 = arith.negf %438 : vector<8x64xf32>
    %440 = math.exp %439 : vector<8x64xf32>
    %cst_139 = arith.constant 1.000000e+00 : f32
    %441 = vector.broadcast %cst_139 : f32 to vector<8x64xf32>
    %442 = arith.addf %441, %440 : vector<8x64xf32>
    %443 = arith.divf %441, %442 : vector<8x64xf32>
    %444 = vector.extract_strided_slice %437 {offsets = [0, 64], sizes = [8, 32], strides = [1, 1]} : vector<8x128xf32> to vector<8x32xf32>
    %445 = math.tanh %444 : vector<8x32xf32>
    %446 = vector.extract_strided_slice %437 {offsets = [0, 96], sizes = [8, 32], strides = [1, 1]} : vector<8x128xf32> to vector<8x32xf32>
    %447 = arith.negf %446 : vector<8x32xf32>
    %448 = math.exp %447 : vector<8x32xf32>
    %cst_140 = arith.constant 1.000000e+00 : f32
    %449 = vector.broadcast %cst_140 : f32 to vector<8x32xf32>
    %450 = arith.addf %449, %448 : vector<8x32xf32>
    %451 = arith.divf %449, %450 : vector<8x32xf32>
    %452 = vector.extract_strided_slice %443 {offsets = [0, 0], sizes = [8, 32], strides = [1, 1]} : vector<8x64xf32> to vector<8x32xf32>
    %453 = vector.extract_strided_slice %443 {offsets = [0, 32], sizes = [8, 32], strides = [1, 1]} : vector<8x64xf32> to vector<8x32xf32>
    %454 = arith.mulf %453, %430 : vector<8x32xf32>
    %455 = arith.mulf %452, %445 : vector<8x32xf32>
    %456 = arith.addf %454, %455 : vector<8x32xf32>
    %457 = math.tanh %456 : vector<8x32xf32>
    %458 = arith.mulf %451, %457 : vector<8x32xf32>
    %c7_i32_141 = arith.constant 7 : i32
    %459 = arith.index_cast %c7_i32_141 : i32 to index
    %c0_142 = arith.constant 0 : index
    %c0_143 = arith.constant 0 : index
    %460 = vector.load %arg13[%459, %c0_142, %c0_143] : memref<8x8x128xf32, #tpu.memory_space<vmem>>, vector<1x8x128xf32>
    %461 = vector.shape_cast %460 : vector<1x8x128xf32> to vector<8x128xf32>
    %cst_144 = arith.constant dense<0.000000e+00> : vector<8x128xf32>
    %462 = tpu.matmul %458, %264, %cst_144 {dimension_numbers = #tpu.dot_dimension_numbers<[1], [0], [0], [1], [0, 0, 1, 1], [], []>} : vector<8x32xf32>, vector<32x128xf32>, vector<8x128xf32> -> vector<8x128xf32>
    %463 = arith.addf %461, %462 : vector<8x128xf32>
    %464 = vector.extract_strided_slice %463 {offsets = [0, 0], sizes = [8, 64], strides = [1, 1]} : vector<8x128xf32> to vector<8x64xf32>
    %465 = arith.negf %464 : vector<8x64xf32>
    %466 = math.exp %465 : vector<8x64xf32>
    %cst_145 = arith.constant 1.000000e+00 : f32
    %467 = vector.broadcast %cst_145 : f32 to vector<8x64xf32>
    %468 = arith.addf %467, %466 : vector<8x64xf32>
    %469 = arith.divf %467, %468 : vector<8x64xf32>
    %470 = vector.extract_strided_slice %463 {offsets = [0, 64], sizes = [8, 32], strides = [1, 1]} : vector<8x128xf32> to vector<8x32xf32>
    %471 = math.tanh %470 : vector<8x32xf32>
    %472 = vector.extract_strided_slice %463 {offsets = [0, 96], sizes = [8, 32], strides = [1, 1]} : vector<8x128xf32> to vector<8x32xf32>
    %473 = arith.negf %472 : vector<8x32xf32>
    %474 = math.exp %473 : vector<8x32xf32>
    %cst_146 = arith.constant 1.000000e+00 : f32
    %475 = vector.broadcast %cst_146 : f32 to vector<8x32xf32>
    %476 = arith.addf %475, %474 : vector<8x32xf32>
    %477 = arith.divf %475, %476 : vector<8x32xf32>
    %478 = vector.extract_strided_slice %469 {offsets = [0, 0], sizes = [8, 32], strides = [1, 1]} : vector<8x64xf32> to vector<8x32xf32>
    %479 = vector.extract_strided_slice %469 {offsets = [0, 32], sizes = [8, 32], strides = [1, 1]} : vector<8x64xf32> to vector<8x32xf32>
    %480 = arith.mulf %479, %456 : vector<8x32xf32>
    %481 = arith.mulf %478, %471 : vector<8x32xf32>
    %482 = arith.addf %480, %481 : vector<8x32xf32>
    %483 = math.tanh %482 : vector<8x32xf32>
    %484 = arith.mulf %477, %483 : vector<8x32xf32>
    %c8_i32_147 = arith.constant 8 : i32
    %c1_148 = arith.constant 1 : index
    %c0_149 = arith.constant 0 : index
    %c0_150 = arith.constant 0 : index
    %485 = vector.load %arg10[%c1_148, %c0_149, %c0_150] : memref<2x8x32xf32, #tpu.memory_space<vmem>>, vector<1x8x32xf32>
    %486 = vector.shape_cast %485 : vector<1x8x32xf32> to vector<8x32xf32>
    %487 = vector.shape_cast %484 : vector<8x32xf32> to vector<1x8x32xf32>
    tpu.vector_store %arg10[%c1_148, %c0_149, %c0_150], %487 {strides = array<i32>} : memref<2x8x32xf32, #tpu.memory_space<vmem>>, vector<1x8x32xf32>,
    %c1_151 = arith.constant 1 : index
    %c0_152 = arith.constant 0 : index
    %c0_153 = arith.constant 0 : index
    %488 = vector.load %arg11[%c1_151, %c0_152, %c0_153] : memref<2x8x32xf32, #tpu.memory_space<vmem>>, vector<1x8x32xf32>
    %489 = vector.shape_cast %488 : vector<1x8x32xf32> to vector<8x32xf32>
    %490 = vector.shape_cast %482 : vector<8x32xf32> to vector<1x8x32xf32>
    tpu.vector_store %arg11[%c1_151, %c0_152, %c0_153], %490 {strides = array<i32>} : memref<2x8x32xf32, #tpu.memory_space<vmem>>, vector<1x8x32xf32>,
    %c1_154 = arith.constant 1 : index
    %c0_155 = arith.constant 0 : index
    %c0_156 = arith.constant 0 : index
    %491 = vector.load %arg10[%c1_154, %c0_155, %c0_156] : memref<2x8x32xf32, #tpu.memory_space<vmem>>, vector<1x8x32xf32>
    %492 = vector.shape_cast %491 : vector<1x8x32xf32> to vector<8x32xf32>
    %c0_157 = arith.constant 0 : index
    %c0_158 = arith.constant 0 : index
    %493 = vector.load %arg9[%c0_157, %c0_158] : memref<8x32xf32, #tpu.memory_space<vmem>>, vector<8x32xf32>
    tpu.vector_store %arg9[%c0_157, %c0_158], %492 {strides = array<i32>} : memref<8x32xf32, #tpu.memory_space<vmem>>, vector<8x32xf32>,
    return
  }
  func.func @transform_0(%arg0: i32, %arg1: i32) -> (i32, i32, i32) {
    %c0_i32 = arith.constant 0 : i32
    %c0_i32_0 = arith.constant 0 : i32
    return %arg1, %arg0, %c0_i32 : i32, i32, i32
  }
  func.func @transform_1(%arg0: i32, %arg1: i32) -> (i32, i32) {
    %c0_i32 = arith.constant 0 : i32
    %c0_i32_0 = arith.constant 0 : i32
    %c0_i32_1 = arith.constant 0 : i32
    return %c0_i32, %c0_i32_0 : i32, i32
  }
  func.func @transform_2(%arg0: i32, %arg1: i32) -> (i32, i32) {
    %c0_i32 = arith.constant 0 : i32
    %c0_i32_0 = arith.constant 0 : i32
    %c0_i32_1 = arith.constant 0 : i32
    return %c0_i32, %c0_i32_0 : i32, i32
  }
  func.func @transform_3(%arg0: i32, %arg1: i32) -> (i32, i32) {
    %c0_i32 = arith.constant 0 : i32
    %c0_i32_0 = arith.constant 0 : i32
    %c0_i32_1 = arith.constant 0 : i32
    return %c0_i32, %c0_i32_0 : i32, i32
  }
  func.func @transform_4(%arg0: i32, %arg1: i32) -> (i32, i32) {
    %c0_i32 = arith.constant 0 : i32
    %c0_i32_0 = arith.constant 0 : i32
    %c0_i32_1 = arith.constant 0 : i32
    return %c0_i32, %c0_i32_0 : i32, i32
  }
  func.func @transform_5(%arg0: i32, %arg1: i32) -> (i32, i32) {
    %c0_i32 = arith.constant 0 : i32
    %c0_i32_0 = arith.constant 0 : i32
    %c0_i32_1 = arith.constant 0 : i32
    return %c0_i32, %c0_i32_0 : i32, i32
  }
  func.func @transform_6(%arg0: i32, %arg1: i32) -> (i32, i32) {
    %c0_i32 = arith.constant 0 : i32
    %c0_i32_0 = arith.constant 0 : i32
    %c0_i32_1 = arith.constant 0 : i32
    return %c0_i32, %c0_i32_0 : i32, i32
  }
  func.func @transform_7(%arg0: i32, %arg1: i32) -> (i32, i32) {
    %c0_i32 = arith.constant 0 : i32
    %c0_i32_0 = arith.constant 0 : i32
    return %arg0, %c0_i32 : i32, i32
  }
}

</mosaic_0001>

<bundles_post_ra>
// kernel: tpu_custom_call.1
= control target key start
LH: loop header
LB: loop body
LE: loop exit
PB: predicated region body
PF: predicated region fallthrough
CT: control target
= control target key end

     0   :  { %12 = vsyncpa [#allocation7], 0  ;;  %s2063_s0 = inlined_call_operand.hbm [shape: f32[8,8,16], index: 0, kind: input, shape index: {}]   ;;  %s2064_s1 = inlined_call_operand.hbm [shape: f32[16,128], index: 1, kind: input, shape index: {}]   ;;  %s2065_s2 = inlined_call_operand.hbm [shape: f32[32,128], index: 2, kind: input, shape index: {}]   ;;  %s2066_s3 = inlined_call_operand.vmem [shape: f32[1,128], index: 3, kind: input, shape index: {}]   ;;  %s2067_s4 = inlined_call_operand.hbm [shape: f32[32,128], index: 4, kind: input, shape index: {}]   ;;  %s2068_s5 = inlined_call_operand.hbm [shape: f32[32,128], index: 5, kind: input, shape index: {}]   ;;  %s2069_s6 = inlined_call_operand.vmem [shape: f32[1,128], index: 6, kind: input, shape index: {}]   ;;  %s2070_s7 = inlined_call_operand.hbm [shape: f32[8,32], index: 7, kind: output, shape index: {}]  }
   0x1   :  { %13 = vsyncpa [#allocation10], 0 }
   0x2   :  { %14 = vsyncpa [#allocation13], 0 }
   0x3   :  { %15 = vsyncpa [#allocation8], 0  ;;  %s33_s26 = sshll.u32 %s2064_s1, 4  ;;  %s1747_s27 = smov [#allocation9]   ;;  %s34_s26 = int_to_ptr.hbm [resolvable:$true] %s33_s26 }
   0x4   :  { %s35_s28 = sshll.u32 %s1747_s27, 4  ;;  %s61_s8 = sshll.u32 %s2067_s4, 4  ;;  %s36_s28 = int_to_ptr.vmem [resolvable:$true] %s35_s28  ;;  %s62_s8 = int_to_ptr.hbm [resolvable:$true] %s61_s8 }
   0x5   :  { %s1748_s9 = smov 128   ;;  %s1749_s10 = smov 8  }
   0x6   :  { %41 = dma.hbm_to_vmem [thread:$0]  %s34_s26, 256, %s36_s28, [#allocation10], %s1748_s9, %s1748_s9, %s1749_s10  }
   0x7   :  { %s1750_s11 = smov [#allocation12]   ;;  %s20_s15 = sshll.u32 %s2063_s0, 4  ;;  %s21_s15 = int_to_ptr.hbm [resolvable:$true] %s20_s15 }
   0x8   :  { %s63_s12 = sshll.u32 %s1750_s11, 4  ;;  %s46_s17 = sshll.u32 %s2065_s2, 4  ;;  %s64_s12 = int_to_ptr.vmem [resolvable:$true] %s63_s12  ;;  %s47_s17 = int_to_ptr.hbm [resolvable:$true] %s46_s17 }
   0x9   :  { %69 = dma.hbm_to_vmem [thread:$0]  %s62_s8, 512, %s64_s12, [#allocation13], %s1748_s9, %s1748_s9, %s1749_s10  }
   0xa   :  { %s1751_s18 = smov [#allocation6]   ;;  %s1752_s4 = smov [#allocation11]  }
   0xb   :  { %s22_s19 = sshll.u32 %s1751_s18, 4  ;;  %s48_s20 = sshll.u32 %s1752_s4, 4  ;;  %s23_s19 = int_to_ptr.vmem [resolvable:$true] %s22_s19  ;;  %s49_s20 = int_to_ptr.vmem [resolvable:$true] %s48_s20 }
   0xc   :  { %28 = dma.hbm_to_vmem [thread:$0]  %s21_s15, 1024, %s23_s19, [#allocation7], %s1748_s9, %s1748_s9, %s1749_s10  }
   0xd   :  { %s74_s23 = sshll.u32 %s2068_s5, 4  ;;  %s1753_s0 = smov [#allocation14]   ;;  %s75_s23 = int_to_ptr.hbm [resolvable:$true] %s74_s23 }
   0xe   :  { %54 = dma.hbm_to_vmem [thread:$0]  %s47_s17, 512, %s49_s20, [#allocation10], %s1748_s9, %s1748_s9, %s1749_s10  }
   0xf   :  { %s76_s24 = sshll.u32 %s1753_s0, 4  ;;  %s77_s24 = int_to_ptr.vmem [resolvable:$true] %s76_s24 }
  0x10   :  { %82 = dma.hbm_to_vmem [thread:$0]  %s75_s23, 512, %s77_s24, [#allocation13], %s1748_s9, %s1748_s9, %s1749_s10  }
  0x11   :  { %1739 = dma.done.wait [#allocation7], 1024  }
  0x12   :  { %1740 = vsyncadd [#allocation7], 4294966272 }
  0x13   :  { %1741 = dma.done.wait [#allocation10], 768  }
  0x14   :  { %1742 = vsyncadd [#allocation10], 4294966528 }
  0x15   :  { %1743 = dma.done.wait [#allocation13], 1024  }
  0x16   :  { %1744 = vsyncadd [#allocation13], 4294966272  ;;  %vm109_vm0 = vcmask 261120   ;;  %v1754_v0 = vmov 0.0   ;;  %v1818_v1 = vld [vmem:[#allocation11 + $0x18] sm:$0xff]  ;;  %v1820_v3 = vld [vmem:[#allocation11 + $0x10] sm:$0xff] }
  0x17   :  { %110 = vst.msk [vmem:[#allocation2] sm:$0xff] %vm109_vm0, %v1754_v0  ;;  %v115_v2 = vld [vmem:[#allocation9 + $0x8] sm:$0xff]  ;;  %225 = vmatpush.msra.mxu1 %v1818_v1  ;;  %v114_v4 = vld [vmem:[#allocation9] sm:$0xff]  ;;  %vm132_vm1 = vcmask 130048   ;;  %v1823_v6 = vld [vmem:[#allocation11 + $0x8] sm:$0xff]  ;;  %296 = vmatpush.msra.mxu2 %v1818_v1  ;;  %s1755_s25 = smov 64  }
  0x18   :  { %111 = vst.msk [vmem:[#allocation2 + $0x8] sm:$0xff] %vm109_vm0, %v1754_v0  ;;  %171 = vmatpush.msra.mxu0 %v115_v2  ;;  %v121_v5 = vld [vmem:[#allocation6] sm:$0xff]  ;;  %v1828_v7 = vld [vmem:[#allocation11] sm:$0xff]  ;;  %s1756_s26 = smov 32   ;;  %v765_v38 = vld [vmem:[#allocation12 + $0x18] sm:$0xff]  ;;  %s1758_s30 = smov [#allocation15]  }
  0x19   :  { %112 = vst.msk [vmem:[#allocation3] sm:$0xff] %vm109_vm0, %v1754_v0  ;;  %226 = vmatpush.msra.mxu1 %v1820_v3  ;;  %297 = vmatpush.msra.mxu2 %v1820_v3  ;;  %v1851_v9 = vld [vmem:[%s2066_s3] ss:$0 sm:$0xff]  ;;  %v122_v40 = vld [vmem:[#allocation6 + $0x8] sm:$0xff]  ;;  %v763_v41 = vld [vmem:[#allocation12 + $0x8] sm:$0xff]  ;;  %s1390_s8 = sshll.u32 %s1758_s30, 4  ;;  %s1391_s8 = int_to_ptr.vmem [resolvable:$true] %s1390_s8 }
  0x1a   :  { %113 = vst.msk [vmem:[#allocation3 + $0x8] sm:$0xff] %vm109_vm0, %v1754_v0  ;;  %172 = vmatpush.msra.mxu0 %v114_v4  ;;  %v764_v39 = vld [vmem:[#allocation12 + $0x10] sm:$0xff]  ;;  %818 = vmatpush.msra.mxu3 %v765_v38  ;;  %v762_v42 = vld [vmem:[#allocation12] sm:$0xff]  ;;  %s1392_s11 = sshll.u32 %s2070_s7, 4  ;;  %s1393_s11 = int_to_ptr.hbm [resolvable:$true] %s1392_s11 }
  0x1b   :  { %1404 = vmatmul.msk.f32.vlgmr.msra.gmra.mxu0 %vm132_vm1, %v121_v5  ;;  %227 = vmatpush.msra.mxu1 %v1823_v6 }
  0x1c   :  { %298 = vmatpush.msra.mxu2 %v1823_v6  ;;  %819 = vmatpush.msra.mxu3 %v764_v39  ;;  %v124_v39 = vld [vmem:[#allocation6 + $0x18] sm:$0xff] }
  0x1d   :  { %228 = vmatpush.msra.mxu1 %v1828_v7 }
  0x1e   :  { %v206_v8 = vld [vmem:[#allocation2] sm:$0xff]  ;;  %299 = vmatpush.msra.mxu2 %v1828_v7  ;;  %820 = vmatpush.msra.mxu3 %v763_v41 }
  0x1f   :  { %1412 = vmatmul.msk.f32.vlgmr.msra.gmra.mxu1 %vm109_vm0, %v206_v8 }
  0x20   :  { %364 = vmatpush.msrb.mxu1 %v1818_v1  ;;  %500 = vmatpush.msrb.mxu2 %v1818_v1  ;;  %v207_v15 = vld [vmem:[#allocation3] sm:$0xff] }
  0x21   :  { %821 = vmatpush.msra.mxu3 %v762_v42 }
  0x22   :  { %365 = vmatpush.msrb.mxu1 %v1820_v3  ;;  %501 = vmatpush.msrb.mxu2 %v1820_v3 }
  0x23   :  { %1405 = vmatmul.msk.f32.gmra.mxu0 %vm132_vm1, %v122_v40 }
  0x24   :  { %366 = vmatpush.msrb.mxu1 %v1823_v6  ;;  %502 = vmatpush.msrb.mxu2 %v1823_v6 }
  0x26   :  { %367 = vmatpush.msrb.mxu1 %v1828_v7  ;;  %503 = vmatpush.msrb.mxu2 %v1828_v7 }
  0x28   :  { %432 = vmatpush.msra.mxu1 %v1818_v1 }
  0x2a   :  { %433 = vmatpush.msra.mxu1 %v1820_v3 }
  0x2c   :  { %434 = vmatpush.msra.mxu1 %v1823_v6 }
  0x2e   :  { %435 = vmatpush.msra.mxu1 %v1828_v7 }
  0x98   :  { %v174_v10 = vpop.f32.mrf.mxu0 }
  0x99   :  { %v175_v11 = vadd.f32 %v1851_v9, %v174_v10  ;;  %v123_v10 = vld [vmem:[#allocation6 + $0x10] sm:$0xff] }
  0x9a   :  { %1406 = vmatmul.msk.f32.gmra.mxu0 %vm132_vm1, %v123_v10 }
  0x9c   :  { %v230_v12 = vpop.f32.mrf.mxu1 }
  0x9d   :  { %v233_v13 = vadd.f32 %v230_v12, %v175_v11 }
  0x9f   :  { %1466 = vtanh.f32 %v233_v13  ;;  %v1413_v16 = vmul.f32 -1.442695, %v233_v13 }
  0xa0   :  { %v177_v45 = vpop.f32.mrf.mxu0 }
  0xa1   :  { %1468 = vpow2.f32 %v1413_v16  ;;  %v178_v46 = vadd.f32 %v1851_v9, %v177_v45 }
  0xa2   :  { %1407 = vmatmul.msk.f32.gmra.mxu0 %vm132_vm1, %v124_v39 }
  0xa5   :  { %v1467_v14 = vpop.eup %1466 }
  0xa6   :  { %260 = vrot.lane.b32.xlu0 %v1467_v14, %s1755_s25 }
  0xa7   :  { %v1469_v17 = vpop.eup %1468 }
  0xa8   :  { %v237_v18 = vadd.f32 1.0, %v1469_v17 }
  0xaa   :  { %1470 = vrcp.f32 %v237_v18  ;;  %v249_v24 = vand.u32 2147483648, %v237_v18  ;;  %vm243_vm3 = vweird.f32 %v237_v18  ;;  %v247_v25 = vand.u32 2147483647, %v237_v18 }
  0xac   :  { %v250_v27 = vor.u32 1.1754944e-38, %v249_v24  ;;  %vm248_vm5 = vcmp.eq.f32.partialorder %v247_v25, 8.507059e+37 }
  0xae   :  { %255 = vrot.lane.b32.xlu0 %v207_v15, %s1756_s26 }
  0xb0   :  { %v1471_v19 = vpop.eup %1470 }
  0xb1   :  { %v239_v20 = vmul.f32 %v1471_v19, %v237_v18  ;;  %vm244_vm2 = vweird.f32 %v1471_v19 }
  0xb2   :  { %vm245_vm4 = vmor %vm243_vm3, %vm244_vm2 }
  0xb3   :  { %v240_v21 = vsub.f32 1.0, %v239_v20 }
  0xb5   :  { %v241_v22 = vmul.f32 %v1471_v19, %v240_v21 }
  0xb7   :  { %v242_v23 = vadd.f32 %v1471_v19, %v241_v22 }
  0xb9   :  { %v246_v26 = vsel %vm245_vm4, %v1471_v19, %v242_v23 }
  0xba   :  { %v251_v29 = vsel %vm248_vm5, %v250_v27, %v246_v26 }
 0x117   :  { %v180_v15 = vpop.f32.mrf.mxu0 }
 0x118   :  { %v261_v28 = vpop.permute.xlu0 %260  ;;  %v181_v16 = vadd.f32 %v1851_v9, %v180_v15 }
 0x119   :  { %v263_v30 = vmul.f32 %v261_v28, %v251_v29 }
 0x11b   :  { %265 = vrot.lane.b32.xlu1 %v263_v30, %s1756_s26 }
 0x120   :  { %v256_v31 = vpop.permute.xlu0 %255 }
 0x121   :  { %v258_v32 = vmul.f32 %v256_v31, %v251_v29 }
 0x18d   :  { %v266_v33 = vpop.permute.xlu1 %265 }
 0x18e   :  { %v268_v34 = vadd.f32 %v266_v33, %v258_v32 }
 0x190   :  { %1472 = vtanh.f32 %v268_v34 }
 0x196   :  { %v1473_v35 = vpop.eup %1472 }
 0x197   :  { %271 = vrot.lane.b32.xlu1 %v1473_v35, %s1755_s25 }
 0x209   :  { %v272_v36 = vpop.permute.xlu1 %271 }
 0x20a   :  { %v274_v37 = vmul.f32 %v272_v36, %v251_v29 }
 0x20c   :  { %276 = vrot.lane.b32.xlu2 %v274_v37, %s1756_s26 }
 0x266   :  { %v277_v43 = vpop.permute.xlu2 %276 }
 0x267   :  { %279 = vst.msk [vmem:[#allocation4] sm:$0xff] %vm109_vm0, %v277_v43  ;;  %1414 = vmatmul.msk.f32.vlgmr.msra.gmra.mxu2 %vm109_vm0, %v277_v43 }
 0x268   :  { %568 = vmatpush.msra.mxu2 %v1818_v1 }
 0x26a   :  { %569 = vmatpush.msra.mxu2 %v1820_v3 }
 0x26c   :  { %570 = vmatpush.msra.mxu2 %v1823_v6 }
 0x26e   :  { %v771_v44 = vld [vmem:[#allocation4] sm:$0xff]  ;;  %571 = vmatpush.msra.mxu2 %v1828_v7 }
 0x26f   :  { %1428 = vmatmul.msk.f32.vlgmr.msra.gmra.mxu3 %vm109_vm0, %v771_v44  ;;  %v183_v44 = vpop.f32.mrf.mxu0 }
 0x270   :  { %v184_v45 = vadd.f32 %v1851_v9, %v183_v44 }
 0x2ea   :  { %v301_v47 = vpop.f32.mrf.mxu2 }
 0x2eb   :  { %v304_v48 = vadd.f32 %v301_v47, %v178_v46 }
 0x2ed   :  { %1474 = vtanh.f32 %v304_v48  ;;  %v1415_v50 = vmul.f32 -1.442695, %v304_v48 }
 0x2ef   :  { %1476 = vpow2.f32 %v1415_v50 }
 0x2f3   :  { %v1475_v49 = vpop.eup %1474 }
 0x2f4   :  { %327 = vrot.lane.b32.xlu2 %v1475_v49, %s1755_s25 }
 0x2f5   :  { %v1477_v51 = vpop.eup %1476 }
 0x2f6   :  { %v308_v52 = vadd.f32 1.0, %v1477_v51 }
 0x2f8   :  { %1478 = vrcp.f32 %v308_v52  ;;  %v320_v58 = vand.u32 2147483648, %v308_v52  ;;  %vm314_vm7 = vweird.f32 %v308_v52  ;;  %v318_v59 = vand.u32 2147483647, %v308_v52 }
 0x2fa   :  { %v321_v61 = vor.u32 1.1754944e-38, %v320_v58  ;;  %vm319_vm9 = vcmp.eq.f32.partialorder %v318_v59, 8.507059e+37 }
 0x2fe   :  { %v1479_v53 = vpop.eup %1478 }
 0x2ff   :  { %v310_v54 = vmul.f32 %v1479_v53, %v308_v52  ;;  %vm315_vm6 = vweird.f32 %v1479_v53 }
 0x300   :  { %vm316_vm8 = vmor %vm314_vm7, %vm315_vm6 }
 0x301   :  { %v311_v55 = vsub.f32 1.0, %v310_v54 }
 0x303   :  { %v312_v56 = vmul.f32 %v1479_v53, %v311_v55 }
 0x305   :  { %v313_v57 = vadd.f32 %v1479_v53, %v312_v56 }
 0x307   :  { %v317_v60 = vsel %vm316_vm8, %v1479_v53, %v313_v57 }
 0x308   :  { %v322_v63 = vsel %vm319_vm9, %v321_v61, %v317_v60 }
 0x309   :  { %v325_v2 = vmul.f32 %v322_v63, %v268_v34 }
 0x34e   :  { %v328_v62 = vpop.permute.xlu2 %327 }
 0x34f   :  { %v330_v0 = vmul.f32 %v328_v62, %v322_v63 }
 0x351   :  { %332 = vrot.lane.b32.xlu0 %v330_v0, %s1756_s26 }
 0x3c3   :  { %v333_v4 = vpop.permute.xlu0 %332 }
 0x3c4   :  { %v335_v5 = vadd.f32 %v333_v4, %v325_v2 }
 0x3c6   :  { %1480 = vtanh.f32 %v335_v5 }
 0x3cc   :  { %v1481_v8 = vpop.eup %1480 }
 0x3cd   :  { %338 = vrot.lane.b32.xlu1 %v1481_v8, %s1755_s25 }
 0x43f   :  { %v339_v11 = vpop.permute.xlu1 %338 }
 0x440   :  { %v341_v12 = vmul.f32 %v339_v11, %v322_v63  ;;  %v125_v11 = vld [vmem:[#allocation6 + $0x20] sm:$0xff] }
 0x441   :  { %1408 = vmatmul.msk.f32.gmra.mxu0 %vm132_vm1, %v125_v11 }
 0x442   :  { %343 = vrot.lane.b32.xlu2 %v341_v12, %s1756_s26 }
 0x49c   :  { %v344_v13 = vpop.permute.xlu2 %343 }
 0x49d   :  { %347 = vst.msk [vmem:[#allocation4 + $0x8] sm:$0xff] %vm109_vm0, %v344_v13  ;;  %1416 = vmatmul.msk.f32.vlgmr.msrb.gmra.mxu1 %vm109_vm0, %v344_v13 }
 0x49e   :  { %636 = vmatpush.msrb.mxu1 %v1818_v1 }
 0x4a0   :  { %637 = vmatpush.msrb.mxu1 %v1820_v3 }
 0x4a2   :  { %638 = vmatpush.msrb.mxu1 %v1823_v6 }
 0x4a4   :  { %v772_v14 = vld [vmem:[#allocation4 + $0x8] sm:$0xff]  ;;  %639 = vmatpush.msrb.mxu1 %v1828_v7 }
 0x4a5   :  { %1429 = vmatmul.msk.f32.gmra.mxu3 %vm109_vm0, %v772_v14 }
 0x4be   :  { %v186_v14 = vpop.f32.mrf.mxu0 }
 0x4bf   :  { %v187_v15 = vadd.f32 %v1851_v9, %v186_v14 }
 0x51a   :  { %v369_v17 = vpop.f32.mrf.mxu1 }
 0x51b   :  { %v372_v18 = vadd.f32 %v369_v17, %v181_v16 }
 0x51d   :  { %1482 = vtanh.f32 %v372_v18  ;;  %v1417_v20 = vmul.f32 -1.442695, %v372_v18 }
 0x51f   :  { %1484 = vpow2.f32 %v1417_v20 }
 0x523   :  { %v1483_v19 = vpop.eup %1482 }
 0x524   :  { %395 = vrot.lane.b32.xlu0 %v1483_v19, %s1755_s25 }
 0x525   :  { %v1485_v21 = vpop.eup %1484 }
 0x526   :  { %v376_v22 = vadd.f32 1.0, %v1485_v21 }
 0x528   :  { %1486 = vrcp.f32 %v376_v22  ;;  %v388_v28 = vand.u32 2147483648, %v376_v22  ;;  %vm382_vm11 = vweird.f32 %v376_v22  ;;  %v386_v29 = vand.u32 2147483647, %v376_v22 }
 0x52a   :  { %v389_v31 = vor.u32 1.1754944e-38, %v388_v28  ;;  %vm387_vm13 = vcmp.eq.f32.partialorder %v386_v29, 8.507059e+37 }
 0x52e   :  { %v1487_v23 = vpop.eup %1486 }
 0x52f   :  { %v378_v24 = vmul.f32 %v1487_v23, %v376_v22  ;;  %vm383_vm10 = vweird.f32 %v1487_v23 }
 0x530   :  { %vm384_vm12 = vmor %vm382_vm11, %vm383_vm10 }
 0x531   :  { %v379_v25 = vsub.f32 1.0, %v378_v24 }
 0x533   :  { %v380_v26 = vmul.f32 %v1487_v23, %v379_v25 }
 0x535   :  { %v381_v27 = vadd.f32 %v1487_v23, %v380_v26 }
 0x537   :  { %v385_v30 = vsel %vm384_vm12, %v1487_v23, %v381_v27 }
 0x538   :  { %v390_v33 = vsel %vm387_vm13, %v389_v31, %v385_v30 }
 0x539   :  { %v393_v35 = vmul.f32 %v390_v33, %v335_v5 }
 0x596   :  { %v396_v32 = vpop.permute.xlu0 %395 }
 0x597   :  { %v398_v34 = vmul.f32 %v396_v32, %v390_v33 }
 0x599   :  { %400 = vrot.lane.b32.xlu1 %v398_v34, %s1756_s26 }
 0x60b   :  { %v401_v36 = vpop.permute.xlu1 %400 }
 0x60c   :  { %v403_v37 = vadd.f32 %v401_v36, %v393_v35  ;;  %v126_v36 = vld [vmem:[#allocation6 + $0x28] sm:$0xff] }
 0x60d   :  { %1409 = vmatmul.msk.f32.gmra.mxu0 %vm132_vm1, %v126_v36 }
 0x60e   :  { %1488 = vtanh.f32 %v403_v37 }
 0x614   :  { %v1489_v38 = vpop.eup %1488 }
 0x615   :  { %406 = vrot.lane.b32.xlu2 %v1489_v38, %s1755_s25 }
 0x66f   :  { %v407_v40 = vpop.permute.xlu2 %406 }
 0x670   :  { %v409_v41 = vmul.f32 %v407_v40, %v390_v33 }
 0x672   :  { %411 = vrot.lane.b32.xlu0 %v409_v41, %s1756_s26 }
 0x68a   :  { %v189_v39 = vpop.f32.mrf.mxu0 }
 0x68b   :  { %v190_v40 = vadd.f32 %v1851_v9, %v189_v39 }
 0x6e4   :  { %v412_v42 = vpop.permute.xlu0 %411 }
 0x6e5   :  { %415 = vst.msk [vmem:[#allocation4 + $0x10] sm:$0xff] %vm109_vm0, %v412_v42  ;;  %1418 = vmatmul.msk.f32.vlgmr.msra.gmra.mxu1 %vm109_vm0, %v412_v42 }
 0x6ec   :  { %v773_v43 = vld [vmem:[#allocation4 + $0x10] sm:$0xff] }
 0x6ed   :  { %1430 = vmatmul.msk.f32.gmra.mxu3 %vm109_vm0, %v773_v43 }
 0x762   :  { %v437_v46 = vpop.f32.mrf.mxu1 }
 0x763   :  { %v440_v47 = vadd.f32 %v437_v46, %v184_v45 }
 0x765   :  { %1490 = vtanh.f32 %v440_v47  ;;  %v1419_v49 = vmul.f32 -1.442695, %v440_v47 }
 0x767   :  { %1492 = vpow2.f32 %v1419_v49 }
 0x76b   :  { %v1491_v48 = vpop.eup %1490 }
 0x76c   :  { %463 = vrot.lane.b32.xlu1 %v1491_v48, %s1755_s25 }
 0x76d   :  { %v1493_v50 = vpop.eup %1492 }
 0x76e   :  { %v444_v51 = vadd.f32 1.0, %v1493_v50 }
 0x770   :  { %1494 = vrcp.f32 %v444_v51  ;;  %v456_v57 = vand.u32 2147483648, %v444_v51  ;;  %vm450_vm15 = vweird.f32 %v444_v51  ;;  %v454_v58 = vand.u32 2147483647, %v444_v51 }
 0x772   :  { %v457_v60 = vor.u32 1.1754944e-38, %v456_v57  ;;  %vm455_vm3 = vcmp.eq.f32.partialorder %v454_v58, 8.507059e+37 }
 0x776   :  { %v1495_v52 = vpop.eup %1494 }
 0x777   :  { %v446_v53 = vmul.f32 %v1495_v52, %v444_v51  ;;  %vm451_vm14 = vweird.f32 %v1495_v52 }
 0x778   :  { %vm452_vm2 = vmor %vm450_vm15, %vm451_vm14 }
 0x779   :  { %v447_v54 = vsub.f32 1.0, %v446_v53 }
 0x77b   :  { %v448_v55 = vmul.f32 %v1495_v52, %v447_v54 }
 0x77d   :  { %v449_v56 = vadd.f32 %v1495_v52, %v448_v55 }
 0x77f   :  { %v453_v59 = vsel %vm452_vm2, %v1495_v52, %v449_v56 }
 0x780   :  { %v458_v62 = vsel %vm455_vm3, %v457_v60, %v453_v59 }
 0x781   :  { %v461_v0 = vmul.f32 %v458_v62, %v403_v37 }
 0x7de   :  { %v464_v61 = vpop.permute.xlu1 %463 }
 0x7df   :  { %v466_v63 = vmul.f32 %v464_v61, %v458_v62 }
 0x7e1   :  { %468 = vrot.lane.b32.xlu2 %v466_v63, %s1756_s26  ;;  %v127_v63 = vld [vmem:[#allocation6 + $0x30] sm:$0xff] }
 0x7e2   :  { %1410 = vmatmul.msk.f32.gmra.mxu0 %vm132_vm1, %v127_v63 }
 0x83b   :  { %v469_v2 = vpop.permute.xlu2 %468 }
 0x83c   :  { %v471_v4 = vadd.f32 %v469_v2, %v461_v0 }
 0x83e   :  { %1496 = vtanh.f32 %v471_v4 }
 0x844   :  { %v1497_v5 = vpop.eup %1496 }
 0x845   :  { %474 = vrot.lane.b32.xlu0 %v1497_v5, %s1755_s25  ;;  %v1922_v5 = vld [vmem:[#allocation14 + $0x10] sm:$0xff] }
 0x85f   :  { %v192_v14 = vpop.f32.mrf.mxu0 }
 0x8b7   :  { %v475_v8 = vpop.permute.xlu0 %474 }
 0x8b8   :  { %v477_v10 = vmul.f32 %v475_v8, %v458_v62  ;;  %v1926_v8 = vld [vmem:[#allocation14 + $0x8] sm:$0xff] }
 0x8ba   :  { %479 = vrot.lane.b32.xlu1 %v477_v10, %s1756_s26  ;;  %v1930_v10 = vld [vmem:[#allocation14] sm:$0xff] }
 0x92c   :  { %v480_v12 = vpop.permute.xlu1 %479 }
 0x92d   :  { %483 = vst.msk [vmem:[#allocation4 + $0x18] sm:$0xff] %vm109_vm0, %v480_v12  ;;  %1420 = vmatmul.msk.f32.vlgmr.msrb.gmra.mxu2 %vm109_vm0, %v480_v12  ;;  %v856_v12 = vld [vmem:[#allocation2 + $0x8] sm:$0xff] }
 0x92e   :  { %704 = vmatpush.msrb.mxu2 %v1818_v1 }
 0x930   :  { %705 = vmatpush.msrb.mxu2 %v1820_v3 }
 0x932   :  { %706 = vmatpush.msrb.mxu2 %v1823_v6 }
 0x934   :  { %v774_v13 = vld [vmem:[#allocation4 + $0x18] sm:$0xff]  ;;  %707 = vmatpush.msrb.mxu2 %v1828_v7 }
 0x935   :  { %1431 = vmatmul.msk.f32.gmra.mxu3 %vm109_vm0, %v774_v13 }
 0x9b0   :  { %v505_v16 = vpop.f32.mrf.mxu2 }
 0x9b1   :  { %v508_v17 = vadd.f32 %v505_v16, %v187_v15  ;;  %v193_v15 = vadd.f32 %v1851_v9, %v192_v14 }
 0x9b3   :  { %1498 = vtanh.f32 %v508_v17  ;;  %v1421_v19 = vmul.f32 -1.442695, %v508_v17 }
 0x9b5   :  { %1500 = vpow2.f32 %v1421_v19  ;;  %v823_v19 = vpop.f32.mrf.mxu3 }
 0x9b9   :  { %v1499_v18 = vpop.eup %1498 }
 0x9ba   :  { %531 = vrot.lane.b32.xlu2 %v1499_v18, %s1755_s25  ;;  %v1952_v18 = vld [vmem:[%s2069_s6] ss:$0 sm:$0xff] }
 0x9bb   :  { %v1501_v1 = vpop.eup %1500 }
 0x9bc   :  { %v512_v3 = vadd.f32 1.0, %v1501_v1  ;;  %v824_v1 = vadd.f32 %v1952_v18, %v823_v19 }
 0x9bd   :  { %v826_v14 = vpop.f32.mrf.mxu3 }
 0x9be   :  { %1502 = vrcp.f32 %v512_v3  ;;  %v524_v23 = vand.u32 2147483648, %v512_v3  ;;  %vm518_vm5 = vweird.f32 %v512_v3  ;;  %v522_v24 = vand.u32 2147483647, %v512_v3 }
 0x9c0   :  { %v525_v26 = vor.u32 1.1754944e-38, %v524_v23  ;;  %vm523_vm7 = vcmp.eq.f32.partialorder %v522_v24, 8.507059e+37 }
 0x9c4   :  { %v1503_v6 = vpop.eup %1502 }
 0x9c5   :  { %v514_v20 = vmul.f32 %v1503_v6, %v512_v3  ;;  %vm519_vm4 = vweird.f32 %v1503_v6 }
 0x9c6   :  { %vm520_vm6 = vmor %vm518_vm5, %vm519_vm4 }
 0x9c7   :  { %v515_v21 = vsub.f32 1.0, %v514_v20 }
 0x9c9   :  { %v516_v7 = vmul.f32 %v1503_v6, %v515_v21  ;;  %v858_v21 = vld [vmem:[#allocation3 + $0x8] sm:$0xff] }
 0x9cb   :  { %v517_v22 = vadd.f32 %v1503_v6, %v516_v7 }
 0x9cd   :  { %v521_v25 = vsel %vm520_vm6, %v1503_v6, %v517_v22 }
 0x9ce   :  { %v526_v28 = vsel %vm523_vm7, %v525_v26, %v521_v25 }
 0x9cf   :  { %v529_v30 = vmul.f32 %v526_v28, %v471_v4  ;;  %v1920_v4 = vld [vmem:[#allocation14 + $0x18] sm:$0xff] }
 0x9d0   :  { %875 = vmatpush.msra.mxu1 %v1920_v4 }
 0x9d2   :  { %876 = vmatpush.msra.mxu1 %v1922_v5 }
 0x9d4   :  { %877 = vmatpush.msra.mxu1 %v1926_v8 }
 0x9d6   :  { %878 = vmatpush.msra.mxu1 %v1930_v10 }
 0xa14   :  { %v532_v27 = vpop.permute.xlu2 %531 }
 0xa15   :  { %v534_v29 = vmul.f32 %v532_v27, %v526_v28 }
 0xa17   :  { %536 = vrot.lane.b32.xlu0 %v534_v29, %s1756_s26 }
 0xa89   :  { %v537_v31 = vpop.permute.xlu0 %536 }
 0xa8a   :  { %v539_v32 = vadd.f32 %v537_v31, %v529_v30 }
 0xa8c   :  { %1504 = vtanh.f32 %v539_v32 }
 0xa92   :  { %v1505_v33 = vpop.eup %1504 }
 0xa93   :  { %542 = vrot.lane.b32.xlu1 %v1505_v33, %s1755_s25 }
 0xb05   :  { %v543_v34 = vpop.permute.xlu1 %542 }
 0xb06   :  { %v545_v35 = vmul.f32 %v543_v34, %v526_v28 }
 0xb08   :  { %547 = vrot.lane.b32.xlu2 %v545_v35, %s1756_s26 }
 0xb62   :  { %v548_v37 = vpop.permute.xlu2 %547 }
 0xb63   :  { %551 = vst.msk [vmem:[#allocation4 + $0x20] sm:$0xff] %vm109_vm0, %v548_v37  ;;  %1422 = vmatmul.msk.f32.vlgmr.msra.gmra.mxu2 %vm109_vm0, %v548_v37 }
 0xb64   :  { %943 = vmatpush.msra.mxu2 %v1920_v4 }
 0xb66   :  { %944 = vmatpush.msra.mxu2 %v1922_v5 }
 0xb68   :  { %945 = vmatpush.msra.mxu2 %v1926_v8 }
 0xb6a   :  { %v775_v38 = vld [vmem:[#allocation4 + $0x20] sm:$0xff]  ;;  %946 = vmatpush.msra.mxu2 %v1930_v10 }
 0xb6b   :  { %1432 = vmatmul.msk.f32.gmra.mxu3 %vm109_vm0, %v775_v38 }
 0xbe6   :  { %v573_v41 = vpop.f32.mrf.mxu2 }
 0xbe7   :  { %v576_v42 = vadd.f32 %v573_v41, %v190_v40 }
 0xbe9   :  { %1506 = vtanh.f32 %v576_v42  ;;  %v1423_v44 = vmul.f32 -1.442695, %v576_v42 }
 0xbeb   :  { %1508 = vpow2.f32 %v1423_v44 }
 0xbef   :  { %v1507_v43 = vpop.eup %1506 }
 0xbf0   :  { %599 = vrot.lane.b32.xlu0 %v1507_v43, %s1755_s25 }
 0xbf1   :  { %v1509_v45 = vpop.eup %1508 }
 0xbf2   :  { %v580_v46 = vadd.f32 1.0, %v1509_v45 }
 0xbf4   :  { %1510 = vrcp.f32 %v580_v46  ;;  %v592_v52 = vand.u32 2147483648, %v580_v46  ;;  %vm586_vm9 = vweird.f32 %v580_v46  ;;  %v590_v53 = vand.u32 2147483647, %v580_v46 }
 0xbf6   :  { %v593_v55 = vor.u32 1.1754944e-38, %v592_v52  ;;  %vm591_vm11 = vcmp.eq.f32.partialorder %v590_v53, 8.507059e+37 }
 0xbfa   :  { %v1511_v47 = vpop.eup %1510 }
 0xbfb   :  { %v582_v48 = vmul.f32 %v1511_v47, %v580_v46  ;;  %vm587_vm8 = vweird.f32 %v1511_v47 }
 0xbfc   :  { %vm588_vm10 = vmor %vm586_vm9, %vm587_vm8 }
 0xbfd   :  { %v583_v49 = vsub.f32 1.0, %v582_v48 }
 0xbff   :  { %v584_v50 = vmul.f32 %v1511_v47, %v583_v49 }
 0xc01   :  { %v585_v51 = vadd.f32 %v1511_v47, %v584_v50 }
 0xc03   :  { %v589_v54 = vsel %vm588_vm10, %v1511_v47, %v585_v51 }
 0xc04   :  { %v594_v57 = vsel %vm591_vm11, %v593_v55, %v589_v54 }
 0xc05   :  { %v597_v59 = vmul.f32 %v594_v57, %v539_v32 }
 0xc62   :  { %v600_v56 = vpop.permute.xlu0 %599 }
 0xc63   :  { %v602_v58 = vmul.f32 %v600_v56, %v594_v57 }
 0xc65   :  { %604 = vrot.lane.b32.xlu1 %v602_v58, %s1756_s26 }
 0xcd7   :  { %v605_v60 = vpop.permute.xlu1 %604 }
 0xcd8   :  { %v1914_v61 = vadd.f32 %v605_v60, %v597_v59 }
 0xcda   :  { %1512 = vtanh.f32 %v1914_v61 }
 0xce0   :  { %v1513_v62 = vpop.eup %1512 }
 0xce1   :  { %610 = vrot.lane.b32.xlu2 %v1513_v62, %s1755_s25 }
 0xd3b   :  { %v611_v0 = vpop.permute.xlu2 %610 }
 0xd3c   :  { %v613_v2 = vmul.f32 %v611_v0, %v594_v57 }
 0xd3e   :  { %615 = vrot.lane.b32.xlu0 %v613_v2, %s1756_s26  ;;  %v128_v2 = vld [vmem:[#allocation6 + $0x38] sm:$0xff] }
 0xd3f   :  { %1411 = vmatmul.msk.f32.gmra.mxu0 %vm132_vm1, %v128_v2 }
 0xdb0   :  { %v616_v11 = vpop.permute.xlu0 %615 }
 0xdb1   :  { %619 = vst.msk [vmem:[#allocation4 + $0x28] sm:$0xff] %vm109_vm0, %v616_v11  ;;  %1424 = vmatmul.msk.f32.vlgmr.msrb.gmra.mxu1 %vm109_vm0, %v616_v11 }
 0xdb2   :  { %1007 = vmatpush.msrb.mxu1 %v1920_v4 }
 0xdb4   :  { %1008 = vmatpush.msrb.mxu1 %v1922_v5 }
 0xdb6   :  { %1009 = vmatpush.msrb.mxu1 %v1926_v8 }
 0xdb8   :  { %v776_v13 = vld [vmem:[#allocation4 + $0x28] sm:$0xff]  ;;  %1010 = vmatpush.msrb.mxu1 %v1930_v10 }
 0xdb9   :  { %1433 = vmatmul.msk.f32.gmra.mxu3 %vm109_vm0, %v776_v13  ;;  %1436 = vmatmul.msk.f32.vlgmr.msra.gmra.mxu1 %vm109_vm0, %v856_v12 }
 0xdba   :  { %1135 = vmatpush.msra.mxu1 %v1920_v4 }
 0xdbc   :  { %1136 = vmatpush.msra.mxu1 %v1922_v5 }
 0xdbe   :  { %1137 = vmatpush.msra.mxu1 %v1926_v8 }
 0xdc0   :  { %1138 = vmatpush.msra.mxu1 %v1930_v10 }
 0xe2e   :  { %v641_v16 = vpop.f32.mrf.mxu1 }
 0xe2f   :  { %v644_v17 = vadd.f32 %v641_v16, %v193_v15  ;;  %v827_v15 = vadd.f32 %v1952_v18, %v826_v14 }
 0xe31   :  { %1514 = vtanh.f32 %v644_v17  ;;  %v1425_v24 = vmul.f32 -1.442695, %v644_v17 }
 0xe36   :  { %v880_v3 = vpop.f32.mrf.mxu1 }
 0xe37   :  { %v1515_v6 = vpop.eup %1514  ;;  %v883_v20 = vadd.f32 %v880_v3, %v824_v1 }
 0xe38   :  { %667 = vrot.lane.b32.xlu1 %v1515_v6, %s1755_s25 }
 0xe39   :  { %1516 = vtanh.f32 %v883_v20  ;;  %v1437_v9 = vmul.f32 -1.442695, %v883_v20 }
 0xe3b   :  { %1518 = vpow2.f32 %v1437_v9 }
 0xe3f   :  { %v1517_v7 = vpop.eup %1516 }
 0xe40   :  { %905 = vrot.lane.b32.xlu1 %v858_v21, %s1756_s26  ;;  %910 = vrot.lane.b32.xlu2 %v1517_v7, %s1755_s25 }
 0xe41   :  { %v1519_v22 = vpop.eup %1518 }
 0xe42   :  { %v887_v23 = vadd.f32 1.0, %v1519_v22 }
 0xe44   :  { %1520 = vrcp.f32 %v887_v23  ;;  %v899_v33 = vand.u32 2147483648, %v887_v23  ;;  %vm893_vm13 = vweird.f32 %v887_v23  ;;  %v897_v34 = vand.u32 2147483647, %v887_v23 }
 0xe45   :  { %1522 = vpow2.f32 %v1425_v24 }
 0xe46   :  { %v900_v37 = vor.u32 1.1754944e-38, %v899_v33  ;;  %vm898_vm15 = vcmp.eq.f32.partialorder %v897_v34, 8.507059e+37 }
 0xe4a   :  { %v1521_v25 = vpop.eup %1520 }
 0xe4b   :  { %v1523_v26 = vpop.eup %1522  ;;  %v889_v27 = vmul.f32 %v1521_v25, %v887_v23  ;;  %vm894_vm12 = vweird.f32 %v1521_v25 }
 0xe4c   :  { %v648_v28 = vadd.f32 1.0, %v1523_v26  ;;  %vm895_vm14 = vmor %vm893_vm13, %vm894_vm12 }
 0xe4d   :  { %v890_v29 = vsub.f32 1.0, %v889_v27 }
 0xe4e   :  { %1524 = vrcp.f32 %v648_v28  ;;  %v660_v44 = vand.u32 2147483648, %v648_v28  ;;  %vm654_vm3 = vweird.f32 %v648_v28  ;;  %v658_v45 = vand.u32 2147483647, %v648_v28 }
 0xe4f   :  { %v891_v30 = vmul.f32 %v1521_v25, %v890_v29 }
 0xe50   :  { %v661_v47 = vor.u32 1.1754944e-38, %v660_v44  ;;  %vm659_vm5 = vcmp.eq.f32.partialorder %v658_v45, 8.507059e+37 }
 0xe51   :  { %v892_v31 = vadd.f32 %v1521_v25, %v891_v30 }
 0xe53   :  { %v896_v35 = vsel %vm895_vm14, %v1521_v25, %v892_v31 }
 0xe54   :  { %v1525_v32 = vpop.eup %1524  ;;  %v901_v39 = vsel %vm898_vm15, %v900_v37, %v896_v35  ;;  %v829_v37 = vpop.f32.mrf.mxu3 }
 0xe55   :  { %v650_v36 = vmul.f32 %v1525_v32, %v648_v28  ;;  %vm655_vm2 = vweird.f32 %v1525_v32 }
 0xe56   :  { %vm656_vm4 = vmor %vm654_vm3, %vm655_vm2 }
 0xe57   :  { %v651_v41 = vsub.f32 1.0, %v650_v36 }
 0xe59   :  { %v652_v42 = vmul.f32 %v1525_v32, %v651_v41 }
 0xe5b   :  { %v653_v43 = vadd.f32 %v1525_v32, %v652_v42 }
 0xe5d   :  { %v657_v46 = vsel %vm656_vm4, %v1525_v32, %v653_v43 }
 0xe5e   :  { %v662_v49 = vsel %vm659_vm5, %v661_v47, %v657_v46 }
 0xe5f   :  { %v665_v56 = vmul.f32 %v662_v49, %v1914_v61 }
 0xe9a   :  { %v911_v38 = vpop.permute.xlu2 %910 }
 0xe9b   :  { %v913_v40 = vmul.f32 %v911_v38, %v901_v39  ;;  %v830_v38 = vadd.f32 %v1952_v18, %v829_v37 }
 0xe9d   :  { %915 = vrot.lane.b32.xlu2 %v913_v40, %s1756_s26 }
 0xeaa   :  { %v668_v48 = vpop.permute.xlu1 %667 }
 0xeab   :  { %v670_v50 = vmul.f32 %v668_v48, %v662_v49 }
 0xead   :  { %672 = vrot.lane.b32.xlu0 %v670_v50, %s1756_s26 }
 0xeb2   :  { %v906_v51 = vpop.permute.xlu1 %905 }
 0xeb3   :  { %v908_v52 = vmul.f32 %v906_v51, %v901_v39 }
 0xef7   :  { %v916_v53 = vpop.permute.xlu2 %915 }
 0xef8   :  { %v1960_v54 = vadd.f32 %v916_v53, %v908_v52 }
 0xefa   :  { %1526 = vtanh.f32 %v1960_v54 }
 0xf00   :  { %v1527_v55 = vpop.eup %1526 }
 0xf01   :  { %921 = vrot.lane.b32.xlu1 %v1527_v55, %s1755_s25 }
 0xf1f   :  { %v673_v57 = vpop.permute.xlu0 %672 }
 0xf20   :  { %v1965_v58 = vadd.f32 %v673_v57, %v665_v56 }
 0xf22   :  { %1528 = vtanh.f32 %v1965_v58 }
 0xf28   :  { %v1529_v59 = vpop.eup %1528 }
 0xf29   :  { %678 = vrot.lane.b32.xlu0 %v1529_v59, %s1755_s25 }
 0xf73   :  { %v922_v60 = vpop.permute.xlu1 %921 }
 0xf74   :  { %v924_v62 = vmul.f32 %v922_v60, %v901_v39 }
 0xf76   :  { %927 = vrot.lane.b32.xlu0 %v924_v62, %s1756_s26 }
 0xf9b   :  { %v679_v63 = vpop.permute.xlu0 %678 }
 0xf9c   :  { %v681_v0 = vmul.f32 %v679_v63, %v662_v49 }
 0xf9e   :  { %683 = vrot.lane.b32.xlu2 %v681_v0, %s1756_s26 }
 0xfe8   :  { %v928_v11 = vpop.permute.xlu0 %927 }
 0xff8   :  { %v684_v61 = vpop.permute.xlu2 %683 }
 0xff9   :  { %687 = vst.msk [vmem:[#allocation4 + $0x30] sm:$0xff] %vm109_vm0, %v684_v61  ;;  %1426 = vmatmul.msk.f32.vlgmr.msrb.gmra.mxu2 %vm109_vm0, %v684_v61  ;;  %v832_v61 = vpop.f32.mrf.mxu3 }
 0xffa   :  { %1071 = vmatpush.msrb.mxu2 %v1920_v4 }
 0xffc   :  { %1072 = vmatpush.msrb.mxu2 %v1922_v5 }
 0xffe   :  { %1073 = vmatpush.msrb.mxu2 %v1926_v8 }
0x1000   :  { %v777_v12 = vld [vmem:[#allocation4 + $0x30] sm:$0xff]  ;;  %1074 = vmatpush.msrb.mxu2 %v1930_v10 }
0x1001   :  { %1434 = vmatmul.msk.f32.gmra.mxu3 %vm109_vm0, %v777_v12  ;;  %1438 = vmatmul.msk.f32.vlgmr.msra.gmra.mxu2 %vm109_vm0, %v928_v11  ;;  %v833_v11 = vadd.f32 %v1952_v18, %v832_v61 }
0x1002   :  { %1199 = vmatpush.msra.mxu2 %v1920_v4 }
0x1004   :  { %1200 = vmatpush.msra.mxu2 %v1922_v5 }
0x1006   :  { %1201 = vmatpush.msra.mxu2 %v1926_v8 }
0x1008   :  { %1202 = vmatpush.msra.mxu2 %v1930_v10 }
0x107c   :  { %v1984_v13 = vpop.f32.mrf.mxu2 }
0x1084   :  { %v948_v16 = vpop.f32.mrf.mxu2 }
0x1085   :  { %v951_v17 = vadd.f32 %v948_v16, %v827_v15 }
0x1087   :  { %1530 = vtanh.f32 %v951_v17  ;;  %v1439_v1 = vmul.f32 -1.442695, %v951_v17 }
0x1089   :  { %1532 = vpow2.f32 %v1439_v1 }
0x108d   :  { %v1531_v19 = vpop.eup %1530 }
0x108e   :  { %974 = vrot.lane.b32.xlu1 %v1531_v19, %s1755_s25 }
0x108f   :  { %v1533_v3 = vpop.eup %1532 }
0x1090   :  { %v955_v6 = vadd.f32 1.0, %v1533_v3 }
0x1092   :  { %1534 = vrcp.f32 %v955_v6  ;;  %v967_v23 = vand.u32 2147483648, %v955_v6  ;;  %vm961_vm6 = vweird.f32 %v955_v6  ;;  %v965_v24 = vand.u32 2147483647, %v955_v6 }
0x1094   :  { %v968_v26 = vor.u32 1.1754944e-38, %v967_v23  ;;  %vm966_vm8 = vcmp.eq.f32.partialorder %v965_v24, 8.507059e+37 }
0x1098   :  { %v1535_v20 = vpop.eup %1534 }
0x1099   :  { %v957_v21 = vmul.f32 %v1535_v20, %v955_v6  ;;  %vm962_vm1 = vweird.f32 %v1535_v20 }
0x109a   :  { %vm963_vm7 = vmor %vm961_vm6, %vm962_vm1 }
0x109b   :  { %v958_v7 = vsub.f32 1.0, %v957_v21 }
0x109d   :  { %v959_v9 = vmul.f32 %v1535_v20, %v958_v7 }
0x109f   :  { %v960_v22 = vadd.f32 %v1535_v20, %v959_v9 }
0x10a1   :  { %v964_v25 = vsel %vm963_vm7, %v1535_v20, %v960_v22 }
0x10a2   :  { %v969_v28 = vsel %vm966_vm8, %v968_v26, %v964_v25 }
0x10a3   :  { %v972_v30 = vmul.f32 %v969_v28, %v1960_v54 }
0x1100   :  { %v975_v27 = vpop.permute.xlu1 %974 }
0x1101   :  { %v977_v29 = vmul.f32 %v975_v27, %v969_v28 }
0x1103   :  { %979 = vrot.lane.b32.xlu2 %v977_v29, %s1756_s26 }
0x115d   :  { %v980_v31 = vpop.permute.xlu2 %979 }
0x115e   :  { %v982_v32 = vadd.f32 %v980_v31, %v972_v30  ;;  %v835_v30 = vpop.f32.mrf.mxu3 }
0x115f   :  { %v836_v31 = vadd.f32 %v1952_v18, %v835_v30 }
0x1160   :  { %1536 = vtanh.f32 %v982_v32 }
0x1166   :  { %v1537_v33 = vpop.eup %1536 }
0x1167   :  { %985 = vrot.lane.b32.xlu0 %v1537_v33, %s1755_s25 }
0x11d9   :  { %v986_v34 = vpop.permute.xlu0 %985 }
0x11da   :  { %v988_v35 = vmul.f32 %v986_v34, %v969_v28 }
0x11dc   :  { %991 = vrot.lane.b32.xlu1 %v988_v35, %s1756_s26 }
0x124e   :  { %v992_v36 = vpop.permute.xlu1 %991 }
0x124f   :  { %1440 = vmatmul.msk.f32.vlgmr.msrb.gmra.mxu1 %vm109_vm0, %v992_v36 }
0x1250   :  { %1263 = vmatpush.msrb.mxu1 %v1920_v4 }
0x1252   :  { %1264 = vmatpush.msrb.mxu1 %v1922_v5 }
0x1254   :  { %1265 = vmatpush.msrb.mxu1 %v1926_v8 }
0x1256   :  { %1266 = vmatpush.msrb.mxu1 %v1930_v10 }
0x12cc   :  { %v1012_v39 = vpop.f32.mrf.mxu1 }
0x12cd   :  { %v1015_v40 = vadd.f32 %v1012_v39, %v830_v38 }
0x12cf   :  { %1538 = vtanh.f32 %v1015_v40  ;;  %v1441_v42 = vmul.f32 -1.442695, %v1015_v40 }
0x12d1   :  { %1540 = vpow2.f32 %v1441_v42 }
0x12d5   :  { %v1539_v41 = vpop.eup %1538 }
0x12d6   :  { %1038 = vrot.lane.b32.xlu2 %v1539_v41, %s1755_s25 }
0x12d7   :  { %v1541_v43 = vpop.eup %1540 }
0x12d8   :  { %v1019_v44 = vadd.f32 1.0, %v1541_v43 }
0x12da   :  { %1542 = vrcp.f32 %v1019_v44  ;;  %v1031_v50 = vand.u32 2147483648, %v1019_v44  ;;  %vm1025_vm10 = vweird.f32 %v1019_v44  ;;  %v1029_v51 = vand.u32 2147483647, %v1019_v44 }
0x12dc   :  { %v1032_v53 = vor.u32 1.1754944e-38, %v1031_v50  ;;  %vm1030_vm12 = vcmp.eq.f32.partialorder %v1029_v51, 8.507059e+37 }
0x12e0   :  { %v1543_v45 = vpop.eup %1542 }
0x12e1   :  { %v1021_v46 = vmul.f32 %v1543_v45, %v1019_v44  ;;  %vm1026_vm9 = vweird.f32 %v1543_v45 }
0x12e2   :  { %vm1027_vm11 = vmor %vm1025_vm10, %vm1026_vm9 }
0x12e3   :  { %v1022_v47 = vsub.f32 1.0, %v1021_v46 }
0x12e5   :  { %v1023_v48 = vmul.f32 %v1543_v45, %v1022_v47 }
0x12e7   :  { %v1024_v49 = vadd.f32 %v1543_v45, %v1023_v48 }
0x12e9   :  { %v1028_v52 = vsel %vm1027_vm11, %v1543_v45, %v1024_v49 }
0x12ea   :  { %v1033_v55 = vsel %vm1030_vm12, %v1032_v53, %v1028_v52 }
0x12eb   :  { %v1036_v57 = vmul.f32 %v1033_v55, %v982_v32 }
0x1330   :  { %v1039_v54 = vpop.permute.xlu2 %1038 }
0x1331   :  { %v1041_v56 = vmul.f32 %v1039_v54, %v1033_v55 }
0x1333   :  { %1043 = vrot.lane.b32.xlu0 %v1041_v56, %s1756_s26 }
0x13a5   :  { %v1044_v59 = vpop.permute.xlu0 %1043 }
0x13a6   :  { %v1046_v60 = vadd.f32 %v1044_v59, %v1036_v57  ;;  %v838_v57 = vpop.f32.mrf.mxu3 }
0x13a7   :  { %v839_v59 = vadd.f32 %v1952_v18, %v838_v57 }
0x13a8   :  { %1544 = vtanh.f32 %v1046_v60 }
0x13ae   :  { %v1545_v62 = vpop.eup %1544 }
0x13af   :  { %1049 = vrot.lane.b32.xlu1 %v1545_v62, %s1755_s25 }
0x1421   :  { %v1050_v63 = vpop.permute.xlu1 %1049 }
0x1422   :  { %v1052_v0 = vmul.f32 %v1050_v63, %v1033_v55 }
0x1424   :  { %1055 = vrot.lane.b32.xlu2 %v1052_v0, %s1756_s26 }
0x147e   :  { %v1056_v2 = vpop.permute.xlu2 %1055 }
0x147f   :  { %1442 = vmatmul.msk.f32.vlgmr.msrb.gmra.mxu2 %vm109_vm0, %v1056_v2 }
0x1480   :  { %1327 = vmatpush.msrb.mxu2 %v1920_v4 }
0x1482   :  { %1328 = vmatpush.msrb.mxu2 %v1922_v5 }
0x1484   :  { %1329 = vmatpush.msrb.mxu2 %v1926_v8 }
0x1486   :  { %1330 = vmatpush.msrb.mxu2 %v1930_v10 }
0x1502   :  { %v1076_v12 = vpop.f32.mrf.mxu2 }
0x1503   :  { %v1079_v14 = vadd.f32 %v1076_v12, %v833_v11 }
0x1505   :  { %1546 = vtanh.f32 %v1079_v14  ;;  %v1443_v16 = vmul.f32 -1.442695, %v1079_v14 }
0x1507   :  { %1548 = vpow2.f32 %v1443_v16  ;;  %v195_v16 = vpop.f32.mrf.mxu0 }
0x150b   :  { %v1547_v15 = vpop.eup %1546 }
0x150c   :  { %1102 = vrot.lane.b32.xlu0 %v1547_v15, %s1755_s25 }
0x150d   :  { %v1549_v17 = vpop.eup %1548 }
0x150e   :  { %v1083_v19 = vadd.f32 1.0, %v1549_v17 }
0x1510   :  { %1550 = vrcp.f32 %v1083_v19  ;;  %v1095_v10 = vand.u32 2147483648, %v1083_v19  ;;  %vm1089_vm14 = vweird.f32 %v1083_v19  ;;  %v1093_v6 = vand.u32 2147483647, %v1083_v19 }
0x1512   :  { %v1096_v21 = vor.u32 1.1754944e-38, %v1095_v10  ;;  %vm1094_vm2 = vcmp.eq.f32.partialorder %v1093_v6, 8.507059e+37 }
0x1516   :  { %v1551_v4 = vpop.eup %1550 }
0x1517   :  { %v1085_v5 = vmul.f32 %v1551_v4, %v1083_v19  ;;  %vm1090_vm13 = vweird.f32 %v1551_v4 }
0x1518   :  { %vm1091_vm15 = vmor %vm1089_vm14, %vm1090_vm13 }
0x1519   :  { %v1086_v1 = vsub.f32 1.0, %v1085_v5  ;;  %v1594_v5 = vld [vmem:[%s2066_s3] ss:$0 sm:$0xff]  ;;  %s1757_s3 = smov 96  }
0x151b   :  { %v1087_v8 = vmul.f32 %v1551_v4, %v1086_v1  ;;  %v196_v1 = vadd.f32 %v1594_v5, %v195_v16 }
0x151d   :  { %v1088_v3 = vadd.f32 %v1551_v4, %v1087_v8  ;;  %v712_v10 = vadd.f32 %v1984_v13, %v196_v1 }
0x151f   :  { %v1092_v20 = vsel %vm1091_vm15, %v1551_v4, %v1088_v3 }
0x1520   :  { %v1097_v9 = vsel %vm1094_vm2, %v1096_v21, %v1092_v20 }
0x1521   :  { %v1100_v23 = vmul.f32 %v1097_v9, %v1046_v60 }
0x157e   :  { %v1103_v7 = vpop.permute.xlu0 %1102 }
0x157f   :  { %v1105_v22 = vmul.f32 %v1103_v7, %v1097_v9 }
0x1581   :  { %1107 = vrot.lane.b32.xlu1 %v1105_v22, %s1756_s26 }
0x15f3   :  { %v1108_v24 = vpop.permute.xlu1 %1107 }
0x15f4   :  { %v1110_v25 = vadd.f32 %v1108_v24, %v1100_v23 }
0x15f6   :  { %1552 = vtanh.f32 %v1110_v25 }
0x15fc   :  { %v1553_v26 = vpop.eup %1552 }
0x15fd   :  { %1113 = vrot.lane.b32.xlu2 %v1553_v26, %s1755_s25 }
0x1657   :  { %v1114_v27 = vpop.permute.xlu2 %1113 }
0x1658   :  { %v1116_v28 = vmul.f32 %v1114_v27, %v1097_v9 }
0x165a   :  { %1119 = vrot.lane.b32.xlu0 %v1116_v28, %s1756_s26 }
0x16cc   :  { %v1120_v29 = vpop.permute.xlu0 %1119 }
0x16cd   :  { %1444 = vmatmul.msk.f32.vlgmr.msra.gmra.mxu1 %vm109_vm0, %v1120_v29 }
0x174a   :  { %v1140_v32 = vpop.f32.mrf.mxu1 }
0x174b   :  { %v1143_v33 = vadd.f32 %v1140_v32, %v836_v31 }
0x174d   :  { %1554 = vtanh.f32 %v1143_v33  ;;  %v1445_v35 = vmul.f32 -1.442695, %v1143_v33 }
0x174f   :  { %1556 = vpow2.f32 %v1445_v35 }
0x1753   :  { %v1555_v34 = vpop.eup %1554 }
0x1754   :  { %1166 = vrot.lane.b32.xlu1 %v1555_v34, %s1755_s25 }
0x1755   :  { %v1557_v36 = vpop.eup %1556 }
0x1756   :  { %v1147_v37 = vadd.f32 1.0, %v1557_v36 }
0x1758   :  { %1558 = vrcp.f32 %v1147_v37  ;;  %v1159_v43 = vand.u32 2147483648, %v1147_v37  ;;  %vm1153_vm4 = vweird.f32 %v1147_v37  ;;  %v1157_v44 = vand.u32 2147483647, %v1147_v37 }
0x175a   :  { %v1160_v46 = vor.u32 1.1754944e-38, %v1159_v43  ;;  %vm1158_vm1 = vcmp.eq.f32.partialorder %v1157_v44, 8.507059e+37 }
0x175e   :  { %v1559_v38 = vpop.eup %1558 }
0x175f   :  { %v1149_v39 = vmul.f32 %v1559_v38, %v1147_v37  ;;  %vm1154_vm3 = vweird.f32 %v1559_v38 }
0x1760   :  { %vm1155_vm5 = vmor %vm1153_vm4, %vm1154_vm3 }
0x1761   :  { %v1150_v40 = vsub.f32 1.0, %v1149_v39 }
0x1763   :  { %v1151_v41 = vmul.f32 %v1559_v38, %v1150_v40 }
0x1765   :  { %v1152_v42 = vadd.f32 %v1559_v38, %v1151_v41 }
0x1767   :  { %v1156_v45 = vsel %vm1155_vm5, %v1559_v38, %v1152_v42  ;;  %v841_v42 = vpop.f32.mrf.mxu3 }
0x1768   :  { %v1161_v48 = vsel %vm1158_vm1, %v1160_v46, %v1156_v45  ;;  %v842_v43 = vadd.f32 %v1952_v18, %v841_v42 }
0x1769   :  { %v1164_v50 = vmul.f32 %v1161_v48, %v1110_v25  ;;  %v1427_v25 = vmul.f32 -1.442695, %v712_v10 }
0x17c6   :  { %v1167_v47 = vpop.permute.xlu1 %1166 }
0x17c7   :  { %v1169_v49 = vmul.f32 %v1167_v47, %v1161_v48 }
0x17c9   :  { %1171 = vrot.lane.b32.xlu2 %v1169_v49, %s1756_s26 }
0x1823   :  { %v1172_v51 = vpop.permute.xlu2 %1171 }
0x1824   :  { %v1174_v52 = vadd.f32 %v1172_v51, %v1164_v50 }
0x1826   :  { %1560 = vtanh.f32 %v1174_v52 }
0x182c   :  { %v1561_v53 = vpop.eup %1560 }
0x182d   :  { %1177 = vrot.lane.b32.xlu0 %v1561_v53, %s1755_s25 }
0x189f   :  { %v1178_v54 = vpop.permute.xlu0 %1177 }
0x18a0   :  { %v1180_v55 = vmul.f32 %v1178_v54, %v1161_v48 }
0x18a2   :  { %1183 = vrot.lane.b32.xlu1 %v1180_v55, %s1756_s26 }
0x1914   :  { %v1184_v56 = vpop.permute.xlu1 %1183 }
0x1915   :  { %1446 = vmatmul.msk.f32.vlgmr.msra.gmra.mxu2 %vm109_vm0, %v1184_v56 }
0x1998   :  { %v1204_v60 = vpop.f32.mrf.mxu2 }
0x1999   :  { %v1207_v62 = vadd.f32 %v1204_v60, %v839_v59 }
0x199b   :  { %1562 = vtanh.f32 %v1207_v62  ;;  %v1447_v0 = vmul.f32 -1.442695, %v1207_v62 }
0x199d   :  { %1564 = vpow2.f32 %v1447_v0 }
0x19a1   :  { %v1563_v63 = vpop.eup %1562 }
0x19a2   :  { %1230 = vrot.lane.b32.xlu2 %v1563_v63, %s1755_s25 }
0x19a3   :  { %v1565_v2 = vpop.eup %1564 }
0x19a4   :  { %v1211_v61 = vadd.f32 1.0, %v1565_v2 }
0x19a6   :  { %1566 = vrcp.f32 %v1211_v61  ;;  %v1223_v19 = vand.u32 2147483648, %v1211_v61  ;;  %vm1217_vm7 = vweird.f32 %v1211_v61  ;;  %v1221_v4 = vand.u32 2147483647, %v1211_v61 }
0x19a7   :  { %1568 = vtanh.f32 %v712_v10 }
0x19a8   :  { %v1224_v3 = vor.u32 1.1754944e-38, %v1223_v19  ;;  %vm1222_vm9 = vcmp.eq.f32.partialorder %v1221_v4, 8.507059e+37 }
0x19ac   :  { %v1567_v11 = vpop.eup %1566 }
0x19ad   :  { %v1213_v12 = vmul.f32 %v1567_v11, %v1211_v61  ;;  %vm1218_vm6 = vweird.f32 %v1567_v11  ;;  %v1569_v7 = vpop.eup %1568 }
0x19ae   :  { %vm1219_vm8 = vmor %vm1217_vm7, %vm1218_vm6 }
0x19af   :  { %v1214_v14 = vsub.f32 1.0, %v1213_v12 }
0x19b1   :  { %v1215_v15 = vmul.f32 %v1567_v11, %v1214_v14 }
0x19b3   :  { %v1216_v17 = vadd.f32 %v1567_v11, %v1215_v15 }
0x19b5   :  { %v1220_v8 = vsel %vm1219_vm8, %v1567_v11, %v1216_v17 }
0x19b6   :  { %v1225_v20 = vsel %vm1222_vm9, %v1224_v3, %v1220_v8 }
0x19b7   :  { %v1228_v9 = vmul.f32 %v1225_v20, %v1174_v52 }
0x19fc   :  { %v1231_v6 = vpop.permute.xlu2 %1230 }
0x19fd   :  { %v1233_v21 = vmul.f32 %v1231_v6, %v1225_v20 }
0x19ff   :  { %1235 = vrot.lane.b32.xlu0 %v1233_v21, %s1756_s26 }
0x1a07   :  { %735 = vrot.lane.b32.xlu0 %v1569_v7, %s1755_s25 }
0x1a71   :  { %v1236_v22 = vpop.permute.xlu0 %1235 }
0x1a72   :  { %v2027_v23 = vadd.f32 %v1236_v22, %v1228_v9 }
0x1a74   :  { %1570 = vtanh.f32 %v2027_v23 }
0x1a75   :  { %1572 = vpow2.f32 %v1427_v25 }
0x1a79   :  { %v736_v38 = vpop.permute.xlu0 %735 }
0x1a7a   :  { %v1571_v24 = vpop.eup %1570 }
0x1a7b   :  { %1241 = vrot.lane.b32.xlu1 %v1571_v24, %s1755_s25  ;;  %v1573_v13 = vpop.eup %1572 }
0x1a7c   :  { %v716_v26 = vadd.f32 1.0, %v1573_v13 }
0x1a7e   :  { %1574 = vrcp.f32 %v716_v26  ;;  %v728_v34 = vand.u32 2147483648, %v716_v26  ;;  %vm722_vm11 = vweird.f32 %v716_v26  ;;  %v726_v35 = vand.u32 2147483647, %v716_v26 }
0x1a80   :  { %v729_v37 = vor.u32 1.1754944e-38, %v728_v34  ;;  %vm727_vm13 = vcmp.eq.f32.partialorder %v726_v35, 8.507059e+37 }
0x1a84   :  { %v1575_v27 = vpop.eup %1574 }
0x1a85   :  { %v718_v28 = vmul.f32 %v1575_v27, %v716_v26  ;;  %vm723_vm10 = vweird.f32 %v1575_v27 }
0x1a86   :  { %vm724_vm12 = vmor %vm722_vm11, %vm723_vm10 }
0x1a87   :  { %v719_v29 = vsub.f32 1.0, %v718_v28 }
0x1a89   :  { %v720_v30 = vmul.f32 %v1575_v27, %v719_v29 }
0x1a8b   :  { %v721_v32 = vadd.f32 %v1575_v27, %v720_v30 }
0x1a8d   :  { %v725_v36 = vsel %vm724_vm12, %v1575_v27, %v721_v32 }
0x1a8e   :  { %v730_v39 = vsel %vm727_vm13, %v729_v37, %v725_v36 }
0x1a8f   :  { %v738_v40 = vmul.f32 %v736_v38, %v730_v39  ;;  %v733_v47 = vmul.f32 %v730_v39, %v1965_v58 }
0x1aed   :  { %v1242_v31 = vpop.permute.xlu1 %1241 }
0x1aee   :  { %v1244_v33 = vmul.f32 %v1242_v31, %v1225_v20 }
0x1af0   :  { %1247 = vrot.lane.b32.xlu2 %v1244_v33, %s1756_s26 }
0x1af8   :  { %740 = vrot.lane.b32.xlu2 %v738_v40, %s1756_s26 }
0x1b4a   :  { %v1248_v41 = vpop.permute.xlu2 %1247 }
0x1b4b   :  { %1448 = vmatmul.msk.f32.vlgmr.msrb.gmra.mxu1 %vm109_vm0, %v1248_v41 }
0x1b52   :  { %v741_v46 = vpop.permute.xlu2 %740 }
0x1b53   :  { %v2036_v48 = vadd.f32 %v741_v46, %v733_v47 }
0x1bc8   :  { %v1268_v44 = vpop.f32.mrf.mxu1 }
0x1bc9   :  { %v1271_v45 = vadd.f32 %v1268_v44, %v842_v43 }
0x1bcb   :  { %1576 = vtanh.f32 %v1271_v45  ;;  %v1449_v51 = vmul.f32 -1.442695, %v1271_v45 }
0x1bcc   :  { %1578 = vtanh.f32 %v2036_v48 }
0x1bcd   :  { %1580 = vpow2.f32 %v1449_v51 }
0x1bd1   :  { %v1577_v49 = vpop.eup %1576 }
0x1bd2   :  { %1294 = vrot.lane.b32.xlu1 %v1577_v49, %s1755_s25  ;;  %v1579_v50 = vpop.eup %1578 }
0x1bd3   :  { %v1581_v52 = vpop.eup %1580 }
0x1bd4   :  { %v1275_v53 = vadd.f32 1.0, %v1581_v52 }
0x1bd6   :  { %1582 = vrcp.f32 %v1275_v53  ;;  %v1287_v59 = vand.u32 2147483648, %v1275_v53  ;;  %vm1281_vm15 = vweird.f32 %v1275_v53  ;;  %v1285_v60 = vand.u32 2147483647, %v1275_v53 }
0x1bd8   :  { %v1288_v63 = vor.u32 1.1754944e-38, %v1287_v59  ;;  %vm1286_vm3 = vcmp.eq.f32.partialorder %v1285_v60, 8.507059e+37 }
0x1bda   :  { %746 = vrot.lane.b32.xlu1 %v1579_v50, %s1755_s25 }
0x1bdc   :  { %v1583_v54 = vpop.eup %1582 }
0x1bdd   :  { %v1277_v55 = vmul.f32 %v1583_v54, %v1275_v53  ;;  %vm1282_vm14 = vweird.f32 %v1583_v54 }
0x1bde   :  { %vm1283_vm2 = vmor %vm1281_vm15, %vm1282_vm14 }
0x1bdf   :  { %v1278_v56 = vsub.f32 1.0, %v1277_v55 }
0x1be1   :  { %v1279_v57 = vmul.f32 %v1583_v54, %v1278_v56 }
0x1be3   :  { %v1280_v58 = vadd.f32 %v1583_v54, %v1279_v57 }
0x1be5   :  { %v1284_v62 = vsel %vm1283_vm2, %v1583_v54, %v1280_v58 }
0x1be6   :  { %v1289_v2 = vsel %vm1286_vm3, %v1288_v63, %v1284_v62 }
0x1be7   :  { %v1292_v14 = vmul.f32 %v1289_v2, %v2027_v23 }
0x1c44   :  { %v1295_v0 = vpop.permute.xlu1 %1294 }
0x1c45   :  { %v1297_v61 = vmul.f32 %v1295_v0, %v1289_v2 }
0x1c47   :  { %1299 = vrot.lane.b32.xlu0 %v1297_v61, %s1756_s26 }
0x1c4c   :  { %v747_v11 = vpop.permute.xlu1 %746 }
0x1c4d   :  { %v749_v12 = vmul.f32 %v747_v11, %v730_v39 }
0x1c4f   :  { %751 = vrot.lane.b32.xlu0 %v749_v12, %s1756_s26 }
0x1cb9   :  { %v1300_v15 = vpop.permute.xlu0 %1299 }
0x1cba   :  { %v1302_v16 = vadd.f32 %v1300_v15, %v1292_v14 }
0x1cbc   :  { %1584 = vtanh.f32 %v1302_v16 }
0x1cc1   :  { %v752_v17 = vpop.permute.xlu0 %751 }
0x1cc2   :  { %v1585_v19 = vpop.eup %1584  ;;  %755 = vst.msk [vmem:[#allocation4 + $0x38] sm:$0xff] %vm109_vm0, %v752_v17 }
0x1cc3   :  { %756 = vst.msk [vmem:[#allocation2] sm:$0xff] %vm109_vm0, %v752_v17  ;;  %1305 = vrot.lane.b32.xlu2 %v1585_v19, %s1755_s25 }
0x1cc9   :  { %v778_v4 = vld [vmem:[#allocation4 + $0x38] sm:$0xff] }
0x1cca   :  { %1435 = vmatmul.msk.f32.gmra.mxu3 %vm109_vm0, %v778_v4 }
0x1d1d   :  { %v1306_v5 = vpop.permute.xlu2 %1305 }
0x1d1e   :  { %v1308_v1 = vmul.f32 %v1306_v5, %v1289_v2 }
0x1d20   :  { %1311 = vrot.lane.b32.xlu1 %v1308_v1, %s1756_s26 }
0x1d4d   :  { %v844_v3 = vpop.f32.mrf.mxu3 }
0x1d4e   :  { %v845_v10 = vadd.f32 %v1952_v18, %v844_v3 }
0x1d92   :  { %v1312_v8 = vpop.permute.xlu1 %1311 }
0x1d93   :  { %1450 = vmatmul.msk.f32.vlgmr.msrb.gmra.mxu2 %vm109_vm0, %v1312_v8 }
0x1e16   :  { %v1332_v6 = vpop.f32.mrf.mxu2 }
0x1e17   :  { %v1335_v20 = vadd.f32 %v1332_v6, %v845_v10 }
0x1e19   :  { %1586 = vtanh.f32 %v1335_v20  ;;  %v1451_v7 = vmul.f32 -1.442695, %v1335_v20 }
0x1e1b   :  { %1588 = vpow2.f32 %v1451_v7 }
0x1e1f   :  { %v1587_v21 = vpop.eup %1586 }
0x1e20   :  { %1358 = vrot.lane.b32.xlu2 %v1587_v21, %s1755_s25 }
0x1e21   :  { %v1589_v9 = vpop.eup %1588 }
0x1e22   :  { %v1339_v22 = vadd.f32 1.0, %v1589_v9 }
0x1e24   :  { %1590 = vrcp.f32 %v1339_v22  ;;  %v1351_v27 = vand.u32 2147483648, %v1339_v22  ;;  %vm1345_vm5 = vweird.f32 %v1339_v22  ;;  %v1349_v18 = vand.u32 2147483647, %v1339_v22 }
0x1e26   :  { %v1352_v29 = vor.u32 1.1754944e-38, %v1351_v27  ;;  %vm1350_vm6 = vcmp.eq.f32.partialorder %v1349_v18, 8.507059e+37 }
0x1e2a   :  { %v1591_v23 = vpop.eup %1590 }
0x1e2b   :  { %v1341_v24 = vmul.f32 %v1591_v23, %v1339_v22  ;;  %vm1346_vm4 = vweird.f32 %v1591_v23 }
0x1e2c   :  { %vm1347_vm1 = vmor %vm1345_vm5, %vm1346_vm4 }
0x1e2d   :  { %v1342_v25 = vsub.f32 1.0, %v1341_v24 }
0x1e2f   :  { %v1343_v13 = vmul.f32 %v1591_v23, %v1342_v25 }
0x1e31   :  { %v1344_v26 = vadd.f32 %v1591_v23, %v1343_v13 }
0x1e33   :  { %v1348_v28 = vsel %vm1347_vm1, %v1591_v23, %v1344_v26 }
0x1e34   :  { %v1353_v31 = vsel %vm1350_vm6, %v1352_v29, %v1348_v28 }
0x1e35   :  { %v1356_v33 = vmul.f32 %v1353_v31, %v1302_v16 }
0x1e7a   :  { %v1359_v30 = vpop.permute.xlu2 %1358 }
0x1e7b   :  { %v1361_v32 = vmul.f32 %v1359_v30, %v1353_v31 }
0x1e7d   :  { %1363 = vrot.lane.b32.xlu0 %v1361_v32, %s1756_s26 }
0x1e85   :  { %758 = vrot.lane.b32.xlu0 %v2036_v48, %s1757_s3 }
0x1eef   :  { %v1364_v34 = vpop.permute.xlu0 %1363 }
0x1ef0   :  { %v1366_v35 = vadd.f32 %v1364_v34, %v1356_v33 }
0x1ef2   :  { %1592 = vtanh.f32 %v1366_v35 }
0x1ef7   :  { %v759_v36 = vpop.permute.xlu0 %758 }
0x1ef8   :  { %v1593_v37 = vpop.eup %1592  ;;  %761 = vst.msk [vmem:[#allocation3] sm:$0xff] %vm109_vm0, %v759_v36 }
0x1ef9   :  { %1369 = vrot.lane.b32.xlu1 %v1593_v37, %s1755_s25 }
0x1f01   :  { %1379 = vrot.lane.b32.xlu1 %v1366_v35, %s1757_s3 }
0x1f6b   :  { %v1370_v38 = vpop.permute.xlu1 %1369 }
0x1f6c   :  { %v1372_v39 = vmul.f32 %v1370_v38, %v1353_v31 }
0x1f6e   :  { %1374 = vrot.lane.b32.xlu2 %v1372_v39, %s1756_s26 }
0x1f73   :  { %v1380_v40 = vpop.permute.xlu1 %1379 }
0x1f74   :  { %1382 = vst.msk [vmem:[#allocation3 + $0x8] sm:$0xff] %vm109_vm0, %v1380_v40 }
0x1fc8   :  { %v1375_v41 = vpop.permute.xlu2 %1374 }
0x1fc9   :  { %1377 = vst.msk [vmem:[#allocation2 + $0x8] sm:$0xff] %vm109_vm0, %v1375_v41 }
0x1fd0   :  { %v1383_v42 = vld [vmem:[#allocation2 + $0x8] sm:$0xff] }
0x1fd1   :  { %1384 = vst.msk [vmem:[#allocation15] sm:$0xff] %vm109_vm0, %v1383_v42 }
0x1fd2   :  { %1395 = dma.vmem_to_hbm [thread:$0]  %s1391_s8, 128, %s1393_s11, [#allocation8]  }
0x1fd3   :  { %1745 = dma.done.wait [#allocation8], 128  }
0x1fd4   :  { %1746 = vsyncadd [#allocation8], 4294967168 }
0x1fd5   :  { %1400 = vsyncpa [#allocation7], 1 }
0x1fd6   :  { %1401 = vsyncpa [#allocation10], 1 }
0x1fd7   :  { %1402 = vsyncpa [#allocation13], 1 }
0x1fd8   :  { %1403 = vsyncpa [#allocation8], 1 }

</bundles_post_ra>
